<compile_context>
chip_gen: v7x
topology: tpu7x:2x2x1
jax: 0.10.0
libtpu: 0.0.40
codegen_flags: <defaults>
</compile_context>

<pallas_src>
import math
import functools

import jax
import jax.numpy as jnp
from jax.experimental import pallas as pl
from jax.experimental.pallas import tpu as pltpu


# ----------------------------------------------------------------------------
# Host-side weight folding / table construction (tiny, weight-only work)
# ----------------------------------------------------------------------------
def _fold_proj_weights(w_lin, w_conv):
    """Fold MultichannelLinear + Conv2d(C, C, (1, K)) into per-out-channel matrices.

    Returns (C, K*C*F, F) with
      W_p[co, k*C*F + ci*F + fi, fo] = w_conv[co, ci, k] * w_lin[ci, fo, fi]
    """
    C, F, _ = w_lin.shape
    K = w_conv.shape[-1]
    # T[c, k, ci, fi, fo] = w_conv[c, ci, k] * w_lin[ci, fo, fi]
    T = jnp.einsum("cik,ion->ckino", w_conv, w_lin)
    return T.reshape(C, K * C * F, F).astype(jnp.float32)


def _rope_perm(F, num_heads):
    """Column permutation turning interleaved-pair rotate_half into a half split."""
    hd = F // num_heads
    hd2 = hd // 2
    h = jnp.arange(num_heads)
    i = jnp.arange(hd2)
    base = (h[:, None] * hd + 2 * i[None, :]).reshape(-1)  # original x1 (even) indices
    return jnp.concatenate([base, base + 1])               # (F,)


def _rope_half_tables(seq_len, hd):
    inv_freq = 1.0 / (10000.0 ** (jnp.arange(0, hd, 2, dtype=jnp.float32) / hd))
    t = jnp.arange(seq_len, dtype=jnp.float32)
    ang = t[:, None] * inv_freq[None, :]  # (W, hd // 2)
    return jnp.cos(ang), jnp.sin(ang)


# ----------------------------------------------------------------------------
# Fused kernel: projections + RoPE + attention + output linear for one (b, c)
# ----------------------------------------------------------------------------
def _fused_kernel(*refs, num_heads, K, pad, has_mem, has_prev):
    it = iter(refs)
    x_ref = next(it)
    mem_ref = next(it) if has_mem else None
    wq_ref = next(it)
    wkv_ref = next(it)
    ow_ref = next(it)
    bq_ref = next(it)
    bkv_ref = next(it)
    cq_ref = next(it)
    sq_ref = next(it)
    ck_ref = next(it)
    sk_ref = next(it)
    prev_ref = next(it) if has_prev else None
    out_ref = next(it)
    qk_ref = next(it)

    W, _ = x_ref.shape          # (W, C*F)
    F = ow_ref.shape[0]
    Fh = F // 2
    hd = F // num_heads
    hd2 = hd // 2

    def shifted_stack(x_val):
        # x_val: (W, C*F).  Piece k has rows x_val[w + k - pad] with zero fill.
        z = jnp.zeros_like(x_val)
        lo = jnp.concatenate([x_val, z], axis=0)  # (2W, CF): x rows then zeros
        hi = jnp.concatenate([z, x_val], axis=0)  # (2W, CF): zeros then x rows
        pieces = []
        for k in range(K):
            d = k - pad
            if d == 0:
                pieces.append(x_val)
            elif d > 0:
                pieces.append(lo[d:d + W, :])
            else:
                pieces.append(hi[W + d:2 * W + d, :])
        return jnp.concatenate(pieces, axis=1)    # (W, K*C*F)

    x_q = x_ref[...]
    xsh_q = shifted_stack(x_q)
    xsh_kv = shifted_stack(mem_ref[...]) if has_mem else xsh_q

    # Fused (linear -> temporal conv) projections:
    #   q : one (W, K*C*F) @ (K*C*F, F) matmul
    #   kv: one (W, K*C*F) @ (K*C*F, 2F) matmul (k and v share the same source)
    q_pre = jnp.dot(xsh_q, wq_ref[...], preferred_element_type=jnp.float32) + bq_ref[...]
    kv = jnp.dot(xsh_kv, wkv_ref[...], preferred_element_type=jnp.float32) + bkv_ref[...]
    k_pre = kv[:, :F]
    v_pre = kv[:, F:]

    # RoPE: q/k columns are pre-permuted to [x1 halves | x2 halves]; the attention
    # scale is already baked into the q tables, so qk comes out pre-scaled.
    cq = cq_ref[...]
    sq = sq_ref[...]
    ck = ck_ref[...]
    sk = sk_ref[...]
    q1, q2 = q_pre[:, :Fh], q_pre[:, Fh:]
    k1, k2 = k_pre[:, :Fh], k_pre[:, Fh:]
    qr1 = q1 * cq - q2 * sq
    qr2 = q2 * cq + q1 * sq
    kr1 = k1 * ck - k2 * sk
    kr2 = k2 * ck + k1 * sk

    heads = []
    for h in range(num_heads):
        c0, c1 = h * hd2, (h + 1) * hd2
        qh = jnp.concatenate([qr1[:, c0:c1], qr2[:, c0:c1]], axis=1)  # (W, hd)
        kh = jnp.concatenate([kr1[:, c0:c1], kr2[:, c0:c1]], axis=1)  # (W, hd)
        s = jax.lax.dot_general(qh, kh, (((1,), (1,)), ((), ())),
                                preferred_element_type=jnp.float32)   # (W, W)
        if has_prev:
            s = s + prev_ref[h]
        qk_ref[h] = s
        m = jnp.max(s, axis=-1, keepdims=True)
        e = jnp.exp(s - m)
        p = e * pl.reciprocal(jnp.sum(e, axis=-1, keepdims=True), approx=True)
        vh = v_pre[:, h * hd:(h + 1) * hd]                            # original order
        heads.append(jnp.dot(p, vh, preferred_element_type=jnp.float32))

    a = jnp.concatenate(heads, axis=1)                                # (W, F)
    out_ref[...] = jnp.dot(a, ow_ref[...], preferred_element_type=jnp.float32)


# ----------------------------------------------------------------------------
# Wrapper
# ----------------------------------------------------------------------------
def multichannel_multihead_attention(x, params, num_heads, kernel_size=3, padding=1,
                                     mem=None, prev_qk=None):
    """Forward pass. Returns (out, qk) matching the PyTorch module semantics
    (qk includes prev_qk when it is given, as in the reference module)."""
    B, C, F, W = x.shape
    assert F % num_heads == 0 and (F // num_heads) % 2 == 0
    H = num_heads
    hd = F // H
    CF = C * F
    K = kernel_size
    scale = 1.0 / math.sqrt(F)   # module scales by sqrt(h) == sqrt(features)

    # Fold (MultichannelLinear -> Conv2d) into one matrix per output channel;
    # pre-permute q/k output columns so rotate_half becomes a half split; pack
    # k and v into one wide matrix (they share the same input source).
    perm = _rope_perm(F, H)
    wq = _fold_proj_weights(params["q_lin"], params["q_conv_w"])[:, :, perm]
    wk = _fold_proj_weights(params["k_lin"], params["k_conv_w"])[:, :, perm]
    wv = _fold_proj_weights(params["v_lin"], params["v_conv_w"])
    wkv = jnp.concatenate([wk, wv], axis=-1)                     # (C, K*C*F, 2F)
    ow = jnp.transpose(params["o_lin"], (0, 2, 1)).astype(jnp.float32)

    def bias_rows(b):
        return jnp.broadcast_to(b.astype(jnp.float32)[:, None, None], (C, 1, F))

    bq = bias_rows(params["q_conv_b"])
    bkv = jnp.concatenate([bias_rows(params["k_conv_b"]),
                           bias_rows(params["v_conv_b"])], axis=-1)  # (C, 1, 2F)

    cos_b, sin_b = _rope_half_tables(W, hd)
    cos_f = jnp.tile(cos_b, (1, H))
    sin_f = jnp.tile(sin_b, (1, H))
    cq, sq = cos_f * scale, sin_f * scale   # fold attention scale into q rotation
    ck, sk = cos_f, sin_f

    # One boundary transpose to a lane-major (B, W, C*F) layout.
    def to_lane_major(t):
        return jnp.transpose(t, (0, 3, 1, 2)).reshape(B, W, CF)

    xt = to_lane_major(x)
    # TODO(synk): mem with a different sequence length than x is not supported
    # (the kernel assumes Wq == Wkv); same-shape mem works.
    memt = None if mem is None else to_lane_major(mem)

    has_mem = memt is not None
    has_prev = prev_qk is not None

    full_x_spec = pl.BlockSpec((None, W, CF), lambda b, c: (b, 0, 0))
    wq_spec = pl.BlockSpec((None, K * CF, F), lambda b, c: (c, 0, 0))
    wkv_spec = pl.BlockSpec((None, K * CF, 2 * F), lambda b, c: (c, 0, 0))
    ow_spec = pl.BlockSpec((None, F, F), lambda b, c: (c, 0, 0))
    bq_spec = pl.BlockSpec((None, 1, F), lambda b, c: (c, 0, 0))
    bkv_spec = pl.BlockSpec((None, 1, 2 * F), lambda b, c: (c, 0, 0))
    table_spec = pl.BlockSpec((W, F // 2), lambda b, c: (0, 0))
    qk_spec = pl.BlockSpec((None, None, H, W, W), lambda b, c: (b, c, 0, 0, 0))

    in_specs = [full_x_spec]
    inputs = [xt]
    if has_mem:
        in_specs.append(full_x_spec)
        inputs.append(memt)
    in_specs += [wq_spec, wkv_spec, ow_spec, bq_spec, bkv_spec,
                 table_spec, table_spec, table_spec, table_spec]
    inputs += [wq, wkv, ow, bq, bkv, cq, sq, ck, sk]
    if has_prev:
        in_specs.append(qk_spec)
        inputs.append(prev_qk.astype(jnp.float32))

    out_specs = (pl.BlockSpec((None, None, W, F), lambda b, c: (b, c, 0, 0)),
                 pl.BlockSpec((None, None, H, W, W), lambda b, c: (b, c, 0, 0, 0)))
    out_shape = (jax.ShapeDtypeStruct((B, C, W, F), jnp.float32),
                 jax.ShapeDtypeStruct((B, C, H, W, W), jnp.float32))

    kernel = functools.partial(_fused_kernel, num_heads=H, K=K, pad=padding,
                               has_mem=has_mem, has_prev=has_prev)
    out_wf, qk = pl.pallas_call(
        kernel,
        out_shape=out_shape,
        grid=(B, C),
        in_specs=in_specs,
        out_specs=out_specs,
        compiler_params=pltpu.CompilerParams(
            dimension_semantics=("parallel", "parallel"),
            vmem_limit_bytes=32 * 1024 * 1024),
    )(*inputs)

    out = jnp.swapaxes(out_wf, 2, 3)   # (B, C, W, F) -> (B, C, F, W)
    return out, qk


# ----------------------------------------------------------------------------
# Pure-JAX reference (independent formulation) for validation
# ----------------------------------------------------------------------------
def reference_forward(x, params, num_heads, kernel_size, padding, mem=None, prev_qk=None):
    B, C, F, W = x.shape
    hd = F // num_heads

    def mlinear(w, t):
        return jnp.einsum("cij,bcjw->bciw", w, t)

    def conv1xk(w, b, t):
        tp = jnp.pad(t, ((0, 0), (0, 0), (0, 0), (padding, padding)))
        out = jnp.zeros_like(t)
        for kk in range(kernel_size):
            out = out + jnp.einsum("oi,bifw->bofw", w[:, :, kk], tp[:, :, :, kk:kk + W])
        return out + b[None, :, None, None]

    def proj(lw, cw, cb, t):
        return conv1xk(cw, cb, mlinear(lw, t))

    def to_heads(t):
        return jnp.transpose(
            jnp.transpose(t, (0, 1, 3, 2)).reshape(B, C, W, num_heads, hd),
            (0, 1, 3, 2, 4))

    inv_freq = 1.0 / (10000.0 ** (jnp.arange(0, hd, 2, dtype=jnp.float32) / hd))
    t_pos = jnp.arange(W, dtype=jnp.float32)
    freqs = jnp.repeat(t_pos[:, None] * inv_freq[None, :], 2, axis=-1)   # (W, hd)
    cos, sin = jnp.cos(freqs), jnp.sin(freqs)

    def rotate_half(t):
        x1 = t[..., 0::2]
        x2 = t[..., 1::2]
        return jnp.stack([-x2, x1], axis=-1).reshape(t.shape)

    def rope(t):
        return t * cos + rotate_half(t) * sin

    kv = x if mem is None else mem
    q = rope(to_heads(proj(params["q_lin"], params["q_conv_w"], params["q_conv_b"], x)))
    k = rope(to_heads(proj(params["k_lin"], params["k_conv_w"], params["k_conv_b"], kv)))
    v = to_heads(proj(params["v_lin"], params["v_conv_w"], params["v_conv_b"], kv))

    qk = jnp.einsum("bchqd,bchkd->bchqk", q, k) / math.sqrt(F)
    if prev_qk is not None:
        qk = qk + prev_qk
    a = jnp.einsum("bchqk,bchkd->bchqd", jax.nn.softmax(qk, axis=-1), v)
    a = jnp.transpose(a, (0, 1, 3, 2, 4)).reshape(B, C, W, F)
    a = jnp.transpose(a, (0, 1, 3, 2))
    out = mlinear(params["o_lin"], a)
    return out, qk


# ----------------------------------------------------------------------------
if __name__ == "__main__":
    B, C, F, W = 2, 4, 32, 8          # batch, channels, features (H), seq len (W)
    NUM_HEADS, K, PAD = 4, 3, 1

    key = jax.random.PRNGKey(0)
    keys = jax.random.split(key, 13)
    lb = 1.0 / math.sqrt(F)           # MultichannelLinear uniform bound
    cb = 1.0 / math.sqrt(C * K)       # Conv2d default init bound (fan_in = C*1*K)

    params = {
        "q_lin":    jax.random.uniform(keys[0], (C, F, F), jnp.float32, -lb, lb),
        "q_conv_w": jax.random.uniform(keys[1], (C, C, K), jnp.float32, -cb, cb),
        "q_conv_b": jax.random.uniform(keys[2], (C,),      jnp.float32, -cb, cb),
        "k_lin":    jax.random.uniform(keys[3], (C, F, F), jnp.float32, -lb, lb),
        "k_conv_w": jax.random.uniform(keys[4], (C, C, K), jnp.float32, -cb, cb),
        "k_conv_b": jax.random.uniform(keys[5], (C,),      jnp.float32, -cb, cb),
        "v_lin":    jax.random.uniform(keys[6], (C, F, F), jnp.float32, -lb, lb),
        "v_conv_w": jax.random.uniform(keys[7], (C, C, K), jnp.float32, -cb, cb),
        "v_conv_b": jax.random.uniform(keys[8], (C,),      jnp.float32, -cb, cb),
        "o_lin":    jax.random.uniform(keys[9], (C, F, F), jnp.float32, -lb, lb),
    }
    x = jax.random.normal(keys[10], (B, C, F, W), jnp.float32)

    # --- path 1: no mem, no prev_qk (lean kernel variant) ---
    out, qk = multichannel_multihead_attention(x, params, NUM_HEADS,
                                               kernel_size=K, padding=PAD)
    out, qk = jax.block_until_ready((out, qk))
    ref_out, ref_qk = reference_forward(x, params, NUM_HEADS, K, PAD)
    assert out.shape == (B, C, F, W) and qk.shape == (B, C, NUM_HEADS, W, W)
    assert jnp.allclose(out, ref_out, atol=2e-3, rtol=2e-3)
    assert jnp.allclose(qk, ref_qk, atol=2e-3, rtol=2e-3)

    # --- path 2: mem + prev_qk chaining (same sequence length as x) ---
    memv = jax.random.normal(keys[11], (B, C, F, W), jnp.float32)
    prev = 0.1 * jax.random.normal(keys[12], (B, C, NUM_HEADS, W, W), jnp.float32)
    out2, qk2 = multichannel_multihead_attention(x, params, NUM_HEADS, kernel_size=K,
                                                 padding=PAD, mem=memv, prev_qk=prev)
    out2, qk2 = jax.block_until_ready((out2, qk2))
    ref_out2, ref_qk2 = reference_forward(x, params, NUM_HEADS, K, PAD,
                                          mem=memv, prev_qk=prev)
    assert jnp.allclose(out2, ref_out2, atol=2e-3, rtol=2e-3)
    assert jnp.allclose(qk2, ref_qk2, atol=2e-3, rtol=2e-3)

    print("KERNEL_OK")
</pallas_src>

<mosaic_0001>
module attributes {stable_mosaic.version = 11 : i64} {
  func.func @_fused_kernel(%arg0: i32, %arg1: i32, %arg2: memref<1x8x128xf32, #tpu.memory_space<vmem>>, %arg3: memref<1x384x32xf32, #tpu.memory_space<vmem>>, %arg4: memref<1x384x64xf32, #tpu.memory_space<vmem>>, %arg5: memref<1x32x32xf32, #tpu.memory_space<vmem>>, %arg6: memref<1x1x32xf32, #tpu.memory_space<vmem>>, %arg7: memref<1x1x64xf32, #tpu.memory_space<vmem>>, %arg8: memref<8x16xf32, #tpu.memory_space<vmem>>, %arg9: memref<8x16xf32, #tpu.memory_space<vmem>>, %arg10: memref<8x16xf32, #tpu.memory_space<vmem>>, %arg11: memref<8x16xf32, #tpu.memory_space<vmem>>, %arg12: memref<1x1x8x32xf32, #tpu.memory_space<vmem>>, %arg13: memref<1x1x4x8x8xf32, #tpu.memory_space<vmem>>) attributes {dimension_semantics = [#tpu.dimension_semantics<parallel>, #tpu.dimension_semantics<parallel>], iteration_bounds = array<i64: 2, 4>, scalar_prefetch = 0 : i64, scratch_operands = 0 : i64, tpu.core_type = #tpu.core_type<tc>, window_params = [{transform_indices = @transform_0, window_bounds = array<i64: 1, 8, 128>}, {transform_indices = @transform_1, window_bounds = array<i64: 1, 384, 32>}, {transform_indices = @transform_2, window_bounds = array<i64: 1, 384, 64>}, {transform_indices = @transform_3, window_bounds = array<i64: 1, 32, 32>}, {transform_indices = @transform_4, window_bounds = array<i64: 1, 1, 32>}, {transform_indices = @transform_5, window_bounds = array<i64: 1, 1, 64>}, {pipeline_mode = #tpu.pipeline_mode<synchronous>, transform_indices = @transform_6, window_bounds = array<i64: 8, 16>}, {pipeline_mode = #tpu.pipeline_mode<synchronous>, transform_indices = @transform_7, window_bounds = array<i64: 8, 16>}, {pipeline_mode = #tpu.pipeline_mode<synchronous>, transform_indices = @transform_8, window_bounds = array<i64: 8, 16>}, {pipeline_mode = #tpu.pipeline_mode<synchronous>, transform_indices = @transform_9, window_bounds = array<i64: 8, 16>}, {transform_indices = @transform_10, window_bounds = array<i64: 1, 1, 8, 32>}, {transform_indices = @transform_11, window_bounds = array<i64: 1, 1, 4, 8, 8>}]} {
    %c0 = arith.constant 0 : index
    %c0_0 = arith.constant 0 : index
    %c0_1 = arith.constant 0 : index
    %0 = vector.load %arg2[%c0, %c0_0, %c0_1] : memref<1x8x128xf32, #tpu.memory_space<vmem>>, vector<1x8x128xf32>
    %1 = vector.shape_cast %0 : vector<1x8x128xf32> to vector<8x128xf32>
    %cst = arith.constant 0.000000e+00 : f32
    %2 = vector.broadcast %cst : f32 to vector<8x128xf32>
    %3 = tpu.concatenate %1, %2 in 0 : vector<8x128xf32>, vector<8x128xf32> -> vector<16x128xf32>
    %4 = tpu.concatenate %2, %1 in 0 : vector<8x128xf32>, vector<8x128xf32> -> vector<16x128xf32>
    %5 = vector.extract_strided_slice %4 {offsets = [7, 0], sizes = [8, 128], strides = [1, 1]} : vector<16x128xf32> to vector<8x128xf32>
    %6 = vector.extract_strided_slice %3 {offsets = [1, 0], sizes = [8, 128], strides = [1, 1]} : vector<16x128xf32> to vector<8x128xf32>
    %7 = tpu.concatenate %5, %1, %6 in 1 : vector<8x128xf32>, vector<8x128xf32>, vector<8x128xf32> -> vector<8x384xf32>
    %c0_2 = arith.constant 0 : index
    %c0_3 = arith.constant 0 : index
    %c0_4 = arith.constant 0 : index
    %8 = vector.load %arg3[%c0_2, %c0_3, %c0_4] : memref<1x384x32xf32, #tpu.memory_space<vmem>>, vector<1x384x32xf32>
    %9 = vector.shape_cast %8 : vector<1x384x32xf32> to vector<384x32xf32>
    %cst_5 = arith.constant dense<0.000000e+00> : vector<8x32xf32>
    %10 = tpu.matmul %7, %9, %cst_5 {dimension_numbers = #tpu.dot_dimension_numbers<[1], [0], [0], [1], [0, 0, 1, 1], [], []>} : vector<8x384xf32>, vector<384x32xf32>, vector<8x32xf32> -> vector<8x32xf32>
    %c0_6 = arith.constant 0 : index
    %c0_7 = arith.constant 0 : index
    %c0_8 = arith.constant 0 : index
    %11 = vector.load %arg6[%c0_6, %c0_7, %c0_8] : memref<1x1x32xf32, #tpu.memory_space<vmem>>, vector<1x1x32xf32>
    %12 = vector.shape_cast %11 : vector<1x1x32xf32> to vector<1x32xf32>
    %13 = vector.broadcast %12 : vector<1x32xf32> to vector<8x32xf32>
    %14 = arith.addf %10, %13 : vector<8x32xf32>
    %c0_9 = arith.constant 0 : index
    %c0_10 = arith.constant 0 : index
    %c0_11 = arith.constant 0 : index
    %15 = vector.load %arg4[%c0_9, %c0_10, %c0_11] : memref<1x384x64xf32, #tpu.memory_space<vmem>>, vector<1x384x64xf32>
    %16 = vector.shape_cast %15 : vector<1x384x64xf32> to vector<384x64xf32>
    %cst_12 = arith.constant dense<0.000000e+00> : vector<8x64xf32>
    %17 = tpu.matmul %7, %16, %cst_12 {dimension_numbers = #tpu.dot_dimension_numbers<[1], [0], [0], [1], [0, 0, 1, 1], [], []>} : vector<8x384xf32>, vector<384x64xf32>, vector<8x64xf32> -> vector<8x64xf32>
    %c0_13 = arith.constant 0 : index
    %c0_14 = arith.constant 0 : index
    %c0_15 = arith.constant 0 : index
    %18 = vector.load %arg7[%c0_13, %c0_14, %c0_15] : memref<1x1x64xf32, #tpu.memory_space<vmem>>, vector<1x1x64xf32>
    %19 = vector.shape_cast %18 : vector<1x1x64xf32> to vector<1x64xf32>
    %20 = vector.broadcast %19 : vector<1x64xf32> to vector<8x64xf32>
    %21 = arith.addf %17, %20 : vector<8x64xf32>
    %22 = vector.extract_strided_slice %21 {offsets = [0, 0], sizes = [8, 32], strides = [1, 1]} : vector<8x64xf32> to vector<8x32xf32>
    %23 = vector.extract_strided_slice %21 {offsets = [0, 32], sizes = [8, 32], strides = [1, 1]} : vector<8x64xf32> to vector<8x32xf32>
    %c0_16 = arith.constant 0 : index
    %c0_17 = arith.constant 0 : index
    %24 = vector.load %arg8[%c0_16, %c0_17] : memref<8x16xf32, #tpu.memory_space<vmem>>, vector<8x16xf32>
    %c0_18 = arith.constant 0 : index
    %c0_19 = arith.constant 0 : index
    %25 = vector.load %arg9[%c0_18, %c0_19] : memref<8x16xf32, #tpu.memory_space<vmem>>, vector<8x16xf32>
    %c0_20 = arith.constant 0 : index
    %c0_21 = arith.constant 0 : index
    %26 = vector.load %arg10[%c0_20, %c0_21] : memref<8x16xf32, #tpu.memory_space<vmem>>, vector<8x16xf32>
    %c0_22 = arith.constant 0 : index
    %c0_23 = arith.constant 0 : index
    %27 = vector.load %arg11[%c0_22, %c0_23] : memref<8x16xf32, #tpu.memory_space<vmem>>, vector<8x16xf32>
    %28 = vector.extract_strided_slice %14 {offsets = [0, 0], sizes = [8, 16], strides = [1, 1]} : vector<8x32xf32> to vector<8x16xf32>
    %29 = vector.extract_strided_slice %14 {offsets = [0, 16], sizes = [8, 16], strides = [1, 1]} : vector<8x32xf32> to vector<8x16xf32>
    %30 = vector.extract_strided_slice %22 {offsets = [0, 0], sizes = [8, 16], strides = [1, 1]} : vector<8x32xf32> to vector<8x16xf32>
    %31 = vector.extract_strided_slice %22 {offsets = [0, 16], sizes = [8, 16], strides = [1, 1]} : vector<8x32xf32> to vector<8x16xf32>
    %32 = arith.mulf %28, %24 : vector<8x16xf32>
    %33 = arith.mulf %29, %25 : vector<8x16xf32>
    %34 = arith.subf %32, %33 : vector<8x16xf32>
    %35 = arith.mulf %29, %24 : vector<8x16xf32>
    %36 = arith.mulf %28, %25 : vector<8x16xf32>
    %37 = arith.addf %35, %36 : vector<8x16xf32>
    %38 = arith.mulf %30, %26 : vector<8x16xf32>
    %39 = arith.mulf %31, %27 : vector<8x16xf32>
    %40 = arith.subf %38, %39 : vector<8x16xf32>
    %41 = arith.mulf %31, %26 : vector<8x16xf32>
    %42 = arith.mulf %30, %27 : vector<8x16xf32>
    %43 = arith.addf %41, %42 : vector<8x16xf32>
    %44 = vector.extract_strided_slice %34 {offsets = [0, 0], sizes = [8, 4], strides = [1, 1]} : vector<8x16xf32> to vector<8x4xf32>
    %45 = vector.extract_strided_slice %37 {offsets = [0, 0], sizes = [8, 4], strides = [1, 1]} : vector<8x16xf32> to vector<8x4xf32>
    %46 = tpu.concatenate %44, %45 in 1 : vector<8x4xf32>, vector<8x4xf32> -> vector<8x8xf32>
    %47 = vector.extract_strided_slice %40 {offsets = [0, 0], sizes = [8, 4], strides = [1, 1]} : vector<8x16xf32> to vector<8x4xf32>
    %48 = vector.extract_strided_slice %43 {offsets = [0, 0], sizes = [8, 4], strides = [1, 1]} : vector<8x16xf32> to vector<8x4xf32>
    %49 = tpu.concatenate %47, %48 in 1 : vector<8x4xf32>, vector<8x4xf32> -> vector<8x8xf32>
    %cst_24 = arith.constant dense<0.000000e+00> : vector<8x8xf32>
    %50 = tpu.matmul %46, %49, %cst_24 {dimension_numbers = #tpu.dot_dimension_numbers<[1], [1], [0], [0], [0, 0, 1, 0], [], []>} : vector<8x8xf32>, vector<8x8xf32>, vector<8x8xf32> -> vector<8x8xf32>
    %c0_25 = arith.constant 0 : index
    %c0_26 = arith.constant 0 : index
    %c0_27 = arith.constant 0 : index
    %c0_28 = arith.constant 0 : index
    %c0_29 = arith.constant 0 : index
    %51 = vector.load %arg13[%c0_25, %c0_26, %c0_27, %c0_28, %c0_29] : memref<1x1x4x8x8xf32, #tpu.memory_space<vmem>>, vector<1x1x1x8x8xf32>
    %52 = vector.shape_cast %51 : vector<1x1x1x8x8xf32> to vector<8x8xf32>
    %53 = vector.shape_cast %50 : vector<8x8xf32> to vector<1x1x1x8x8xf32>
    tpu.vector_store %arg13[%c0_25, %c0_26, %c0_27, %c0_28, %c0_29], %53 {strides = array<i32>} : memref<1x1x4x8x8xf32, #tpu.memory_space<vmem>>, vector<1x1x1x8x8xf32>,
    %cst_30 = arith.constant dense<0xFF800000> : vector<8xf32>
    %54 = vector.multi_reduction <maximumf>, %50, %cst_30 [1] : vector<8x8xf32> to vector<8xf32>
    %55 = vector.shape_cast %54 : vector<8xf32> to vector<8x1xf32>
    %56 = vector.broadcast %55 : vector<8x1xf32> to vector<8x8xf32>
    %57 = arith.subf %50, %56 : vector<8x8xf32>
    %58 = math.exp %57 : vector<8x8xf32>
    %cst_31 = arith.constant dense<0.000000e+00> : vector<8xf32>
    %59 = vector.multi_reduction <add>, %58, %cst_31 [1] : vector<8x8xf32> to vector<8xf32>
    %60 = vector.shape_cast %59 : vector<8xf32> to vector<8x1xf32>
    %61 = tpu.reciprocal %60 {approx = true} : vector<8x1xf32> -> vector<8x1xf32>
    %62 = vector.broadcast %61 : vector<8x1xf32> to vector<8x8xf32>
    %63 = arith.mulf %58, %62 : vector<8x8xf32>
    %64 = vector.extract_strided_slice %23 {offsets = [0, 0], sizes = [8, 8], strides = [1, 1]} : vector<8x32xf32> to vector<8x8xf32>
    %cst_32 = arith.constant dense<0.000000e+00> : vector<8x8xf32>
    %65 = tpu.matmul %63, %64, %cst_32 {dimension_numbers = #tpu.dot_dimension_numbers<[1], [0], [0], [1], [0, 0, 1, 1], [], []>} : vector<8x8xf32>, vector<8x8xf32>, vector<8x8xf32> -> vector<8x8xf32>
    %66 = vector.extract_strided_slice %34 {offsets = [0, 4], sizes = [8, 4], strides = [1, 1]} : vector<8x16xf32> to vector<8x4xf32>
    %67 = vector.extract_strided_slice %37 {offsets = [0, 4], sizes = [8, 4], strides = [1, 1]} : vector<8x16xf32> to vector<8x4xf32>
    %68 = tpu.concatenate %66, %67 in 1 : vector<8x4xf32>, vector<8x4xf32> -> vector<8x8xf32>
    %69 = vector.extract_strided_slice %40 {offsets = [0, 4], sizes = [8, 4], strides = [1, 1]} : vector<8x16xf32> to vector<8x4xf32>
    %70 = vector.extract_strided_slice %43 {offsets = [0, 4], sizes = [8, 4], strides = [1, 1]} : vector<8x16xf32> to vector<8x4xf32>
    %71 = tpu.concatenate %69, %70 in 1 : vector<8x4xf32>, vector<8x4xf32> -> vector<8x8xf32>
    %cst_33 = arith.constant dense<0.000000e+00> : vector<8x8xf32>
    %72 = tpu.matmul %68, %71, %cst_33 {dimension_numbers = #tpu.dot_dimension_numbers<[1], [1], [0], [0], [0, 0, 1, 0], [], []>} : vector<8x8xf32>, vector<8x8xf32>, vector<8x8xf32> -> vector<8x8xf32>
    %c0_34 = arith.constant 0 : index
    %c0_35 = arith.constant 0 : index
    %c1 = arith.constant 1 : index
    %c0_36 = arith.constant 0 : index
    %c0_37 = arith.constant 0 : index
    %73 = vector.load %arg13[%c0_34, %c0_35, %c1, %c0_36, %c0_37] : memref<1x1x4x8x8xf32, #tpu.memory_space<vmem>>, vector<1x1x1x8x8xf32>
    %74 = vector.shape_cast %73 : vector<1x1x1x8x8xf32> to vector<8x8xf32>
    %75 = vector.shape_cast %72 : vector<8x8xf32> to vector<1x1x1x8x8xf32>
    tpu.vector_store %arg13[%c0_34, %c0_35, %c1, %c0_36, %c0_37], %75 {strides = array<i32>} : memref<1x1x4x8x8xf32, #tpu.memory_space<vmem>>, vector<1x1x1x8x8xf32>,
    %cst_38 = arith.constant dense<0xFF800000> : vector<8xf32>
    %76 = vector.multi_reduction <maximumf>, %72, %cst_38 [1] : vector<8x8xf32> to vector<8xf32>
    %77 = vector.shape_cast %76 : vector<8xf32> to vector<8x1xf32>
    %78 = vector.broadcast %77 : vector<8x1xf32> to vector<8x8xf32>
    %79 = arith.subf %72, %78 : vector<8x8xf32>
    %80 = math.exp %79 : vector<8x8xf32>
    %cst_39 = arith.constant dense<0.000000e+00> : vector<8xf32>
    %81 = vector.multi_reduction <add>, %80, %cst_39 [1] : vector<8x8xf32> to vector<8xf32>
    %82 = vector.shape_cast %81 : vector<8xf32> to vector<8x1xf32>
    %83 = tpu.reciprocal %82 {approx = true} : vector<8x1xf32> -> vector<8x1xf32>
    %84 = vector.broadcast %83 : vector<8x1xf32> to vector<8x8xf32>
    %85 = arith.mulf %80, %84 : vector<8x8xf32>
    %86 = vector.extract_strided_slice %23 {offsets = [0, 8], sizes = [8, 8], strides = [1, 1]} : vector<8x32xf32> to vector<8x8xf32>
    %cst_40 = arith.constant dense<0.000000e+00> : vector<8x8xf32>
    %87 = tpu.matmul %85, %86, %cst_40 {dimension_numbers = #tpu.dot_dimension_numbers<[1], [0], [0], [1], [0, 0, 1, 1], [], []>} : vector<8x8xf32>, vector<8x8xf32>, vector<8x8xf32> -> vector<8x8xf32>
    %88 = vector.extract_strided_slice %34 {offsets = [0, 8], sizes = [8, 4], strides = [1, 1]} : vector<8x16xf32> to vector<8x4xf32>
    %89 = vector.extract_strided_slice %37 {offsets = [0, 8], sizes = [8, 4], strides = [1, 1]} : vector<8x16xf32> to vector<8x4xf32>
    %90 = tpu.concatenate %88, %89 in 1 : vector<8x4xf32>, vector<8x4xf32> -> vector<8x8xf32>
    %91 = vector.extract_strided_slice %40 {offsets = [0, 8], sizes = [8, 4], strides = [1, 1]} : vector<8x16xf32> to vector<8x4xf32>
    %92 = vector.extract_strided_slice %43 {offsets = [0, 8], sizes = [8, 4], strides = [1, 1]} : vector<8x16xf32> to vector<8x4xf32>
    %93 = tpu.concatenate %91, %92 in 1 : vector<8x4xf32>, vector<8x4xf32> -> vector<8x8xf32>
    %cst_41 = arith.constant dense<0.000000e+00> : vector<8x8xf32>
    %94 = tpu.matmul %90, %93, %cst_41 {dimension_numbers = #tpu.dot_dimension_numbers<[1], [1], [0], [0], [0, 0, 1, 0], [], []>} : vector<8x8xf32>, vector<8x8xf32>, vector<8x8xf32> -> vector<8x8xf32>
    %c0_42 = arith.constant 0 : index
    %c0_43 = arith.constant 0 : index
    %c2 = arith.constant 2 : index
    %c0_44 = arith.constant 0 : index
    %c0_45 = arith.constant 0 : index
    %95 = vector.load %arg13[%c0_42, %c0_43, %c2, %c0_44, %c0_45] : memref<1x1x4x8x8xf32, #tpu.memory_space<vmem>>, vector<1x1x1x8x8xf32>
    %96 = vector.shape_cast %95 : vector<1x1x1x8x8xf32> to vector<8x8xf32>
    %97 = vector.shape_cast %94 : vector<8x8xf32> to vector<1x1x1x8x8xf32>
    tpu.vector_store %arg13[%c0_42, %c0_43, %c2, %c0_44, %c0_45], %97 {strides = array<i32>} : memref<1x1x4x8x8xf32, #tpu.memory_space<vmem>>, vector<1x1x1x8x8xf32>,
    %cst_46 = arith.constant dense<0xFF800000> : vector<8xf32>
    %98 = vector.multi_reduction <maximumf>, %94, %cst_46 [1] : vector<8x8xf32> to vector<8xf32>
    %99 = vector.shape_cast %98 : vector<8xf32> to vector<8x1xf32>
    %100 = vector.broadcast %99 : vector<8x1xf32> to vector<8x8xf32>
    %101 = arith.subf %94, %100 : vector<8x8xf32>
    %102 = math.exp %101 : vector<8x8xf32>
    %cst_47 = arith.constant dense<0.000000e+00> : vector<8xf32>
    %103 = vector.multi_reduction <add>, %102, %cst_47 [1] : vector<8x8xf32> to vector<8xf32>
    %104 = vector.shape_cast %103 : vector<8xf32> to vector<8x1xf32>
    %105 = tpu.reciprocal %104 {approx = true} : vector<8x1xf32> -> vector<8x1xf32>
    %106 = vector.broadcast %105 : vector<8x1xf32> to vector<8x8xf32>
    %107 = arith.mulf %102, %106 : vector<8x8xf32>
    %108 = vector.extract_strided_slice %23 {offsets = [0, 16], sizes = [8, 8], strides = [1, 1]} : vector<8x32xf32> to vector<8x8xf32>
    %cst_48 = arith.constant dense<0.000000e+00> : vector<8x8xf32>
    %109 = tpu.matmul %107, %108, %cst_48 {dimension_numbers = #tpu.dot_dimension_numbers<[1], [0], [0], [1], [0, 0, 1, 1], [], []>} : vector<8x8xf32>, vector<8x8xf32>, vector<8x8xf32> -> vector<8x8xf32>
    %110 = vector.extract_strided_slice %34 {offsets = [0, 12], sizes = [8, 4], strides = [1, 1]} : vector<8x16xf32> to vector<8x4xf32>
    %111 = vector.extract_strided_slice %37 {offsets = [0, 12], sizes = [8, 4], strides = [1, 1]} : vector<8x16xf32> to vector<8x4xf32>
    %112 = tpu.concatenate %110, %111 in 1 : vector<8x4xf32>, vector<8x4xf32> -> vector<8x8xf32>
    %113 = vector.extract_strided_slice %40 {offsets = [0, 12], sizes = [8, 4], strides = [1, 1]} : vector<8x16xf32> to vector<8x4xf32>
    %114 = vector.extract_strided_slice %43 {offsets = [0, 12], sizes = [8, 4], strides = [1, 1]} : vector<8x16xf32> to vector<8x4xf32>
    %115 = tpu.concatenate %113, %114 in 1 : vector<8x4xf32>, vector<8x4xf32> -> vector<8x8xf32>
    %cst_49 = arith.constant dense<0.000000e+00> : vector<8x8xf32>
    %116 = tpu.matmul %112, %115, %cst_49 {dimension_numbers = #tpu.dot_dimension_numbers<[1], [1], [0], [0], [0, 0, 1, 0], [], []>} : vector<8x8xf32>, vector<8x8xf32>, vector<8x8xf32> -> vector<8x8xf32>
    %c0_50 = arith.constant 0 : index
    %c0_51 = arith.constant 0 : index
    %c3 = arith.constant 3 : index
    %c0_52 = arith.constant 0 : index
    %c0_53 = arith.constant 0 : index
    %117 = vector.load %arg13[%c0_50, %c0_51, %c3, %c0_52, %c0_53] : memref<1x1x4x8x8xf32, #tpu.memory_space<vmem>>, vector<1x1x1x8x8xf32>
    %118 = vector.shape_cast %117 : vector<1x1x1x8x8xf32> to vector<8x8xf32>
    %119 = vector.shape_cast %116 : vector<8x8xf32> to vector<1x1x1x8x8xf32>
    tpu.vector_store %arg13[%c0_50, %c0_51, %c3, %c0_52, %c0_53], %119 {strides = array<i32>} : memref<1x1x4x8x8xf32, #tpu.memory_space<vmem>>, vector<1x1x1x8x8xf32>,
    %cst_54 = arith.constant dense<0xFF800000> : vector<8xf32>
    %120 = vector.multi_reduction <maximumf>, %116, %cst_54 [1] : vector<8x8xf32> to vector<8xf32>
    %121 = vector.shape_cast %120 : vector<8xf32> to vector<8x1xf32>
    %122 = vector.broadcast %121 : vector<8x1xf32> to vector<8x8xf32>
    %123 = arith.subf %116, %122 : vector<8x8xf32>
    %124 = math.exp %123 : vector<8x8xf32>
    %cst_55 = arith.constant dense<0.000000e+00> : vector<8xf32>
    %125 = vector.multi_reduction <add>, %124, %cst_55 [1] : vector<8x8xf32> to vector<8xf32>
    %126 = vector.shape_cast %125 : vector<8xf32> to vector<8x1xf32>
    %127 = tpu.reciprocal %126 {approx = true} : vector<8x1xf32> -> vector<8x1xf32>
    %128 = vector.broadcast %127 : vector<8x1xf32> to vector<8x8xf32>
    %129 = arith.mulf %124, %128 : vector<8x8xf32>
    %130 = vector.extract_strided_slice %23 {offsets = [0, 24], sizes = [8, 8], strides = [1, 1]} : vector<8x32xf32> to vector<8x8xf32>
    %cst_56 = arith.constant dense<0.000000e+00> : vector<8x8xf32>
    %131 = tpu.matmul %129, %130, %cst_56 {dimension_numbers = #tpu.dot_dimension_numbers<[1], [0], [0], [1], [0, 0, 1, 1], [], []>} : vector<8x8xf32>, vector<8x8xf32>, vector<8x8xf32> -> vector<8x8xf32>
    %132 = tpu.concatenate %65, %87, %109, %131 in 1 : vector<8x8xf32>, vector<8x8xf32>, vector<8x8xf32>, vector<8x8xf32> -> vector<8x32xf32>
    %c0_57 = arith.constant 0 : index
    %c0_58 = arith.constant 0 : index
    %c0_59 = arith.constant 0 : index
    %133 = vector.load %arg5[%c0_57, %c0_58, %c0_59] : memref<1x32x32xf32, #tpu.memory_space<vmem>>, vector<1x32x32xf32>
    %134 = vector.shape_cast %133 : vector<1x32x32xf32> to vector<32x32xf32>
    %cst_60 = arith.constant dense<0.000000e+00> : vector<8x32xf32>
    %135 = tpu.matmul %132, %134, %cst_60 {dimension_numbers = #tpu.dot_dimension_numbers<[1], [0], [0], [1], [0, 0, 1, 1], [], []>} : vector<8x32xf32>, vector<32x32xf32>, vector<8x32xf32> -> vector<8x32xf32>
    %c0_61 = arith.constant 0 : index
    %c0_62 = arith.constant 0 : index
    %c0_63 = arith.constant 0 : index
    %c0_64 = arith.constant 0 : index
    %136 = vector.load %arg12[%c0_61, %c0_62, %c0_63, %c0_64] : memref<1x1x8x32xf32, #tpu.memory_space<vmem>>, vector<1x1x8x32xf32>
    %137 = vector.shape_cast %136 : vector<1x1x8x32xf32> to vector<8x32xf32>
    %138 = vector.shape_cast %135 : vector<8x32xf32> to vector<1x1x8x32xf32>
    tpu.vector_store %arg12[%c0_61, %c0_62, %c0_63, %c0_64], %138 {strides = array<i32>} : memref<1x1x8x32xf32, #tpu.memory_space<vmem>>, vector<1x1x8x32xf32>,
    return
  }
  func.func @transform_0(%arg0: i32, %arg1: i32) -> (i32, i32, i32) {
    %c0_i32 = arith.constant 0 : i32
    %c0_i32_0 = arith.constant 0 : i32
    %c0_i32_1 = arith.constant 0 : i32
    return %arg0, %c0_i32, %c0_i32_0 : i32, i32, i32
  }
  func.func @transform_1(%arg0: i32, %arg1: i32) -> (i32, i32, i32) {
    %c0_i32 = arith.constant 0 : i32
    %c0_i32_0 = arith.constant 0 : i32
    %c0_i32_1 = arith.constant 0 : i32
    return %arg1, %c0_i32, %c0_i32_0 : i32, i32, i32
  }
  func.func @transform_2(%arg0: i32, %arg1: i32) -> (i32, i32, i32) {
    %c0_i32 = arith.constant 0 : i32
    %c0_i32_0 = arith.constant 0 : i32
    %c0_i32_1 = arith.constant 0 : i32
    return %arg1, %c0_i32, %c0_i32_0 : i32, i32, i32
  }
  func.func @transform_3(%arg0: i32, %arg1: i32) -> (i32, i32, i32) {
    %c0_i32 = arith.constant 0 : i32
    %c0_i32_0 = arith.constant 0 : i32
    %c0_i32_1 = arith.constant 0 : i32
    return %arg1, %c0_i32, %c0_i32_0 : i32, i32, i32
  }
  func.func @transform_4(%arg0: i32, %arg1: i32) -> (i32, i32, i32) {
    %c0_i32 = arith.constant 0 : i32
    %c0_i32_0 = arith.constant 0 : i32
    %c0_i32_1 = arith.constant 0 : i32
    return %arg1, %c0_i32, %c0_i32_0 : i32, i32, i32
  }
  func.func @transform_5(%arg0: i32, %arg1: i32) -> (i32, i32, i32) {
    %c0_i32 = arith.constant 0 : i32
    %c0_i32_0 = arith.constant 0 : i32
    %c0_i32_1 = arith.constant 0 : i32
    return %arg1, %c0_i32, %c0_i32_0 : i32, i32, i32
  }
  func.func @transform_6(%arg0: i32, %arg1: i32) -> (i32, i32) {
    %c0_i32 = arith.constant 0 : i32
    %c0_i32_0 = arith.constant 0 : i32
    %c0_i32_1 = arith.constant 0 : i32
    return %c0_i32, %c0_i32_0 : i32, i32
  }
  func.func @transform_7(%arg0: i32, %arg1: i32) -> (i32, i32) {
    %c0_i32 = arith.constant 0 : i32
    %c0_i32_0 = arith.constant 0 : i32
    %c0_i32_1 = arith.constant 0 : i32
    return %c0_i32, %c0_i32_0 : i32, i32
  }
  func.func @transform_8(%arg0: i32, %arg1: i32) -> (i32, i32) {
    %c0_i32 = arith.constant 0 : i32
    %c0_i32_0 = arith.constant 0 : i32
    %c0_i32_1 = arith.constant 0 : i32
    return %c0_i32, %c0_i32_0 : i32, i32
  }
  func.func @transform_9(%arg0: i32, %arg1: i32) -> (i32, i32) {
    %c0_i32 = arith.constant 0 : i32
    %c0_i32_0 = arith.constant 0 : i32
    %c0_i32_1 = arith.constant 0 : i32
    return %c0_i32, %c0_i32_0 : i32, i32
  }
  func.func @transform_10(%arg0: i32, %arg1: i32) -> (i32, i32, i32, i32) {
    %c0_i32 = arith.constant 0 : i32
    %c0_i32_0 = arith.constant 0 : i32
    %c0_i32_1 = arith.constant 0 : i32
    return %arg0, %arg1, %c0_i32, %c0_i32_0 : i32, i32, i32, i32
  }
  func.func @transform_11(%arg0: i32, %arg1: i32) -> (i32, i32, i32, i32, i32) {
    %c0_i32 = arith.constant 0 : i32
    %c0_i32_0 = arith.constant 0 : i32
    %c0_i32_1 = arith.constant 0 : i32
    %c0_i32_2 = arith.constant 0 : i32
    return %arg0, %arg1, %c0_i32, %c0_i32_0, %c0_i32_1 : i32, i32, i32, i32, i32
  }
}

</mosaic_0001>

<bundles_post_ra>
// kernel: tpu_custom_call.1
= control target key start
LH: loop header
LB: loop body
LE: loop exit
PB: predicated region body
PF: predicated region fallthrough
CT: control target
= control target key end

     0   :  { %s3148_s0 = inlined_call_operand.vmem [shape: f32[2,8,128], index: 0, kind: input, shape index: {}]   ;;  %s3149_s1 = inlined_call_operand.vmem [shape: f32[4,384,32], index: 1, kind: input, shape index: {}]   ;;  %s3150_s2 = inlined_call_operand.vmem [shape: f32[4,384,64], index: 2, kind: input, shape index: {}]   ;;  %s3151_s3 = inlined_call_operand.vmem [shape: f32[4,32,32], index: 3, kind: input, shape index: {}]   ;;  %s3152_s4 = inlined_call_operand.vmem [shape: f32[4,1,32], index: 4, kind: input, shape index: {}]   ;;  %s3153_s5 = inlined_call_operand.vmem [shape: f32[4,1,64], index: 5, kind: input, shape index: {}]   ;;  %s3154_s6 = inlined_call_operand.vmem [shape: f32[8,16], index: 6, kind: input, shape index: {}]   ;;  %s3155_s7 = inlined_call_operand.vmem [shape: f32[8,16], index: 7, kind: input, shape index: {}]   ;;  %s3156_s8 = inlined_call_operand.vmem [shape: f32[8,16], index: 8, kind: input, shape index: {}]   ;;  %s3157_s9 = inlined_call_operand.vmem [shape: f32[8,16], index: 9, kind: input, shape index: {}]   ;;  %s3158_s10 = inlined_call_operand.hbm [shape: f32[2,4,8,32], index: 10, kind: output, shape index: {0}]   ;;  %s3159_s11 = inlined_call_operand.hbm [shape: f32[2,4,4,8,8], index: 11, kind: output, shape index: {1}]  }
   0x1   :  { %3164 = sst [smem:[#allocation11_spill]] %s3148_s0 }
   0x2   :  { %3165 = sst [smem:[#allocation12_spill]] %s3149_s1 }
   0x3   :  { %3166 = sst [smem:[#allocation13_spill]] %s3150_s2 }
   0x4   :  { %3167 = sst [smem:[#allocation14_spill]] %s3151_s3 }
   0x5   :  { %3168 = sst [smem:[#allocation15_spill]] %s3152_s4 }
   0x6   :  { %3169 = sst [smem:[#allocation16_spill]] %s3157_s9 }
   0x7   :  { %17 = vsyncpa [#allocation3], 0 }
   0x8   :  { %19 = vsyncpa [#allocation3 + $0x1], 0 }
   0x9   :  { %20 = vsyncpa [#allocation5], 0 }
   0xa   :  { %22 = vsyncpa [#allocation5 + $0x1], 0  ;;  %s2688_s17 = smov 0   ;;  %s2690_s18 = smov 0  }
   0xb   :  { %s2692_s19 = smov 0   ;;  %s2694_s20 = smov 0  }
   0xc   :  { %s2696_s21 = smov 0   ;;  %s2698_s22 = smov 0  }
   0xd   :  { %s2700_s23 = smov 0   ;;  %s2702_s24 = smov 0  }
   0xe LB: > { %3170 = sst [smem:[#allocation8_spill]] %s2603_s23  ;;  %s1967_s25 = sadd.s32 4294967295, %s2607_s24   ;;  %s2607_s24 = sphi %s2702_s24, %s28_s24   ;;  %s2603_s23 = sphi %s2700_s23, %s3184_s23   ;;  %s2599_s22 = sphi %s2698_s22, %s3189_s22   ;;  %s2595_s21 = sphi %s2696_s21, %s3182_s21   ;;  %s2591_s20 = sphi %s2694_s20, %s3188_s20   ;;  %s2587_s19 = sphi %s2692_s19, %s3187_s19   ;;  %s2583_s18 = sphi %s2690_s18, %s3186_s18   ;;  %s2579_s17 = sphi %s2688_s17, %s3185_s17  }
   0xf   : > { %s1968_s26 = sadd.s32 4294967294, %s2607_s24   ;;  %s37_s27 = sadd.s32 1, %s2599_s22 }
  0x10   : > { %p38_p0 = scmp.ge.s32.totalorder %s37_s27, 4  ;;  %s40_s28 = sadd.s32 1, %s2603_s23 }
  0x11   : > { %p299_p1 = scmp.ne.s32.totalorder %s2587_s19, %s2583_s18  ;;  %p300_p2 = scmp.eq.s32.totalorder %s1967_s25, 7 }
  0x12   : > { %s3191_s27 = smov (%p38_p0, %s37_s27), 0  ;;  %s3193_s28 = smov (!%p38_p0, %s40_s28), %s2603_s23 }
  0x13   : > { %3171 = sst [smem:[#allocation9_spill]] %s3191_s27  ;;  %s285_s29 = ssub.s32 %s2599_s22, %s3191_s27 }
  0x14   : > { %p2739_p3 = por %p300_p2, %p299_p1  ;;  %p42_p4 = scmp.ge.s32.totalorder %s3193_s28, 2 }
  0x15   : > { %p305_p5 = scmp.ne.s32.totalorder %s2583_s18, %s2579_s17  ;;  %p306_p6 = scmp.eq.s32.totalorder %s1968_s26, 7 }
  0x16   : > { %p1971_p7 = scmp.ge.s32.totalorder %s2607_s24, 1  ;;  %s3195_s28 = smov (%p42_p4, %s3193_s28), 0 }
  0x17   : > { %3173 = sst [smem:[#allocation10_spill]] %s3195_s28  ;;  %p2748_p8 = por %p306_p6, %p305_p5 }
  0x18   : > { %p407_p9 = scmp.lt.s32.totalorder %s2607_s24, 9  ;;  %s284_s13 = ssub.s32 %s2603_s23, %s3195_s28 }
  0x19   : > { %s289_s14 = sadd.s32 1, %s2587_s19  ;;  %s286_s15 = sor.u32 %s285_s29, %s284_s13 }
  0x1a   : > { %p408_p10 = pnand %p1971_p7, %p407_p9  ;;  %p287_p11 = scmp.eq.s32.totalorder %s286_s15, 0 }
  0x1b   : > { %p476_p12 = scmp.lt.s32.totalorder (!%p408_p10), %s2591_s20, 3  ;;  %v2609_v0 = vmov (!%p408_p10), 0.0|0.0   ;;  %vm2610_vm0 = vmmov (!%p408_p10), 0   ;;  %v2611_v1 = vmov (!%p408_p10), 0.0   ;;  %s3175_s9 = sld [smem:[#allocation16_spill]] (!%p408_p10)  ;;  %v2776_v3 = vld [vmem:[%s3156_s8] sm:$0xff] (!%p408_p10) }
  0x1c   : > { %s2757_s16 = scalar_select %p287_p11, %s2587_s19, %s289_s14  }
  0x1d   : > { %411 = sbr.rel (%p408_p10) target bundleno = 1674 (0x68a), region = 60  ;;  %2285 = vmatprep.subr.bf16.mxu1 (!%p408_p10), %v2609_v0  ;;  %2164 = vmatprep.mubr.msk.f32.mxu1 (!%p408_p10), %vm2610_vm0, %v2611_v1  ;;  %s2612_s13 = smov (!%p408_p10), 16   ;;  %v2781_v4 = vld [vmem:[%s3155_s7] sm:$0xff] (!%p408_p10)  ;;  %vm501_vm1 = vcmask (!%p408_p10), 1045504   ;;  %vm560_vm2 = vcmask (!%p408_p10), 1040384   ;;  %vm966_vm3 = vcmask (!%p408_p10), 64512  }
  0x1e   : > { %945 = vrot.lane.b32.xlu1 (!%p408_p10), %v2776_v3, %s2612_s13  ;;  %s3176_s1 = sld [smem:[#allocation12_spill]] (!%p408_p10)  ;;  %v2798_v5 = vld [vmem:[%s3154_s6] sm:$0xff] (!%p408_p10)  ;;  %p472_p13 = scmp.lt.s32.totalorder (!%p408_p10), %s2595_s21, 1  ;;  %vm959_vm4 = vcmask (!%p408_p10), 31744   ;;  %vm1684_vm5 = vcmask (!%p408_p10), 130048   ;;  %vm1686_vm6 = vcmask (!%p408_p10), 195584  }
  0x1f   : > { %s3177_s0 = sld [smem:[#allocation11_spill]] (!%p408_p10)  ;;  %s3178_s2 = sld [smem:[#allocation13_spill]] (!%p408_p10)  ;;  %vm1692_vm7 = vcmask (!%p408_p10), 261120  }
  0x20   : > { %s3179_s4 = sld [smem:[#allocation15_spill]] (!%p408_p10)  ;;  %s2618_s26 = smov (!%p408_p10), 104  }
  0x21   : > { %v2766_v2 = vld [vmem:[%s3175_s9] sm:$0xff] (!%p408_p10)  ;;  %s3180_s3 = sld [smem:[#allocation14_spill]] (!%p408_p10) }
  0x22   : > { %935 = vrot.lane.b32.xlu0 (!%p408_p10), %v2766_v2, %s2612_s13 }
  0x24   : > { %s2769_s29 = scalar_select %p476_p12, %s2591_s20, 3 }
  0x25   : > { %s473_s9 = scalar_select %p472_p13, %s2595_s21, 1 }
  0x26   : > { %s2371_s25 = smul.u32 384, %s2769_s29  ;;  %913 = vrot.lane.b32.xlu0 %v2781_v4, %s2612_s13  ;;  %s493_s15 = scalar_lea.vmem %s3179_s4, %s2769_s29 }
  0x27   : > { %s1974_s14 = sshll.u32 %s473_s9, 3  ;;  %s496_s28 = scalar_lea.vmem %s3153_s5, %s2769_s29 }
  0x28   : > { %s2791_s23 = scalar_lea.vmem %s3176_s1, %s2371_s25  ;;  %s475_s27 = scalar_lea.vmem %s3177_s0, %s1974_s14 }
  0x29   : > { %v521_v6 = vld [vmem:[%s2791_s23 + $0x80] sm:$0xff]  ;;  %v522_v7 = vld [vmem:[%s2791_s23 + $0x88] sm:$0xff]  ;;  %v523_v11 = vld [vmem:[%s2791_s23 + $0x90] sm:$0xff]  ;;  %s2870_s14 = scalar_lea.vmem %s3178_s2, %s2371_s25  ;;  %s2613_s9 = smov 112  }
  0x2a   : > { %v505_v8 = vld [vmem:[%s2791_s23] sm:$0xff]  ;;  %v2253_v9 = vpack.c.bf16 %v522_v7, %v521_v6  ;;  %v506_v10 = vld [vmem:[%s2791_s23 + $0x8] sm:$0xff]  ;;  %v524_v12 = vld [vmem:[%s2791_s23 + $0x98] sm:$0xff]  ;;  %923 = vrot.lane.b32.xlu0 %v2798_v5, %s2612_s13  ;;  %s2616_s25 = smov 108  }
  0x2b   : > { %v2255_v13 = vpack.c.bf16 %v506_v10, %v505_v8  ;;  %v2257_v14 = vpack.c.bf16 %v524_v12, %v523_v11  ;;  %v507_v15 = vld [vmem:[%s2791_s23 + $0x10] sm:$0xff]  ;;  %v508_v16 = vld [vmem:[%s2791_s23 + $0x18] sm:$0xff]  ;;  %v537_v17 = vld [vmem:[%s2791_s23 + $0x100] sm:$0xff] }
  0x2c   : > { %2254 = vmatprep.subr.bf16.mxu0 %v2253_v9  ;;  %v538_v18 = vld [vmem:[%s2791_s23 + $0x108] sm:$0xff]  ;;  %v525_v19 = vld [vmem:[%s2791_s23 + $0xa0] sm:$0xff]  ;;  %v2259_v21 = vpack.c.bf16 %v508_v16, %v507_v15  ;;  %v539_v23 = vld [vmem:[%s2791_s23 + $0x110] sm:$0xff]  ;;  %v503_v15 = vrot.slane %v2611_v1, 2 }
  0x2d   : > { %v526_v20 = vld [vmem:[%s2791_s23 + $0xa8] sm:$0xff]  ;;  %2256 = vmatpush3.bf16.msra.mxu0 %v2255_v13  ;;  %v2286_v22 = vpack.c.bf16 %v538_v18, %v537_v17  ;;  %v509_v25 = vld [vmem:[%s2791_s23 + $0x20] sm:$0xff]  ;;  %v540_v27 = vld [vmem:[%s2791_s23 + $0x118] sm:$0xff] }
  0x2e   : > { %2258 = vmatprep.subr.bf16.mxu0 %v2257_v14  ;;  %v2261_v24 = vpack.c.bf16 %v526_v20, %v525_v19  ;;  %v510_v26 = vld [vmem:[%s2791_s23 + $0x28] sm:$0xff]  ;;  %v2289_v28 = vpack.c.bf16 %v540_v27, %v539_v23  ;;  %v527_v29 = vld [vmem:[%s2791_s23 + $0xb0] sm:$0xff]  ;;  %v528_v30 = vld [vmem:[%s2791_s23 + $0xb8] sm:$0xff]  ;;  %v561_v27 = vrot.slane %v2611_v1, 7 }
  0x2f   : > { %2287 = vmatpush3.bf16.msra.mxu1 %v2286_v22  ;;  %v541_v31 = vld [vmem:[%s2791_s23 + $0x120] sm:$0xff]  ;;  %v542_v32 = vld [vmem:[%s2791_s23 + $0x128] sm:$0xff]  ;;  %v2263_v33 = vpack.c.bf16 %v510_v26, %v509_v25  ;;  %v2265_v34 = vpack.c.bf16 %v528_v30, %v527_v29  ;;  %v511_v35 = vld [vmem:[%s2791_s23 + $0x30] sm:$0xff] }
  0x30   : > { %2288 = vmatprep.subr.bf16.mxu1 %v2609_v0  ;;  %v512_v36 = vld [vmem:[%s2791_s23 + $0x38] sm:$0xff]  ;;  %v2292_v37 = vpack.c.bf16 %v542_v32, %v541_v31  ;;  %v529_v38 = vld [vmem:[%s2791_s23 + $0xc0] sm:$0xff]  ;;  %v530_v39 = vld [vmem:[%s2791_s23 + $0xc8] sm:$0xff] }
  0x31   : > { %2260 = vmatpush3.bf16.msra.mxu0 %v2259_v21  ;;  %v543_v40 = vld [vmem:[%s2791_s23 + $0x130] sm:$0xff]  ;;  %v544_v41 = vld [vmem:[%s2791_s23 + $0x138] sm:$0xff]  ;;  %v2267_v42 = vpack.c.bf16 %v512_v36, %v511_v35  ;;  %v2269_v43 = vpack.c.bf16 %v530_v39, %v529_v38  ;;  %v513_v44 = vld [vmem:[%s2791_s23 + $0x40] sm:$0xff] }
  0x32   : > { %2262 = vmatprep.subr.bf16.mxu0 %v2261_v24  ;;  %v514_v45 = vld [vmem:[%s2791_s23 + $0x48] sm:$0xff]  ;;  %v2295_v46 = vpack.c.bf16 %v544_v41, %v543_v40  ;;  %v531_v47 = vld [vmem:[%s2791_s23 + $0xd0] sm:$0xff]  ;;  %v532_v48 = vld [vmem:[%s2791_s23 + $0xd8] sm:$0xff] }
  0x33   : > { %2290 = vmatpush3.bf16.msra.mxu1 %v2289_v28  ;;  %v545_v49 = vld [vmem:[%s2791_s23 + $0x140] sm:$0xff]  ;;  %v546_v50 = vld [vmem:[%s2791_s23 + $0x148] sm:$0xff]  ;;  %v2271_v52 = vpack.c.bf16 %v514_v45, %v513_v44  ;;  %v2273_v54 = vpack.c.bf16 %v532_v48, %v531_v47  ;;  %v515_v55 = vld [vmem:[%s2791_s23 + $0x50] sm:$0xff] }
  0x34   : > { %2291 = vmatprep.subr.bf16.mxu1 %v2609_v0  ;;  %v2844_v51 = vld [vmem:[%s475_s27] sm:$0xff]  ;;  %v516_v56 = vld [vmem:[%s2791_s23 + $0x58] sm:$0xff]  ;;  %v2298_v57 = vpack.c.bf16 %v546_v50, %v545_v49  ;;  %v534_v59 = vld [vmem:[%s2791_s23 + $0xe8] sm:$0xff]  ;;  %s3005_s27 = sand.u32 1, %s2583_s18  }
  0x35   : > { %2264 = vmatpush3.bf16.msra.mxu0 %v2263_v33  ;;  %v499_v53 = vrot.slane %v2844_v51, 1  ;;  %v533_v58 = vld [vmem:[%s2791_s23 + $0xe0] sm:$0xff]  ;;  %v547_v61 = vld [vmem:[%s2791_s23 + $0x150] sm:$0xff]  ;;  %v548_v62 = vld [vmem:[%s2791_s23 + $0x158] sm:$0xff]  ;;  %v2275_v63 = vpack.c.bf16 %v516_v56, %v515_v55  ;;  %v502_v14 = vrot.slane %v2844_v51, 2  ;;  %v562_v28 = vrot.slane %v2844_v51, 7 }
  0x36   : > { %2266 = vmatprep.subr.bf16.mxu0 %v2265_v34  ;;  %v2277_v6 = vpack.c.bf16 %v534_v59, %v533_v58  ;;  %v517_v7 = vld [vmem:[%s2791_s23 + $0x60] sm:$0xff]  ;;  %v518_v8 = vld [vmem:[%s2791_s23 + $0x68] sm:$0xff]  ;;  %v2301_v9 = vpack.c.bf16 %v548_v62, %v547_v61  ;;  %v535_v10 = vld [vmem:[%s2791_s23 + $0xf0] sm:$0xff]  ;;  %s1773_s0 = scalar_lea.sflag [#allocation5], %s3005_s27 }
  0x37   : > { %2293 = vmatpush3.bf16.msra.mxu1 %v2292_v37  ;;  %v2851_v60 = vrot.slane %v499_v53, 7  ;;  %v536_v11 = vld [vmem:[%s2791_s23 + $0xf8] sm:$0xff]  ;;  %v549_v12 = vld [vmem:[%s2791_s23 + $0x160] sm:$0xff]  ;;  %v550_v13 = vld [vmem:[%s2791_s23 + $0x168] sm:$0xff]  ;;  %v2279_v16 = vpack.c.bf16 %v518_v8, %v517_v7  ;;  %v504_v25 = vsel %vm501_vm1, %v502_v14, %v503_v15  ;;  %v566_v35 = vrot.slane %v502_v14, 7 }
  0x38   : > { %2294 = vmatprep.subr.bf16.mxu1 %v2609_v0  ;;  %v2281_v17 = vpack.c.bf16 %v536_v11, %v535_v10  ;;  %v519_v18 = vld [vmem:[%s2791_s23 + $0x70] sm:$0xff]  ;;  %v520_v19 = vld [vmem:[%s2791_s23 + $0x78] sm:$0xff]  ;;  %v2304_v20 = vpack.c.bf16 %v550_v13, %v549_v12  ;;  %v728_v21 = vld [vmem:[%s2870_s14 + $0x80] sm:$0xff]  ;;  %v567_v36 = vrot.slane %v504_v25, 7  ;;  %v2890_v39 = vsel %vm560_vm2, %v561_v27, %v562_v28 }
  0x39   : > { %2268 = vmatpush3.bf16.msra.mxu0 %v2267_v42  ;;  %636 = vmatprep.mubr.f32.mxu0 %v2851_v60  ;;  %v729_v22 = vld [vmem:[%s2870_s14 + $0x88] sm:$0xff]  ;;  %v551_v23 = vld [vmem:[%s2791_s23 + $0x170] sm:$0xff]  ;;  %v552_v24 = vld [vmem:[%s2791_s23 + $0x178] sm:$0xff]  ;;  %v2283_v26 = vpack.c.bf16 %v520_v19, %v519_v18  ;;  %s2615_s23 = smov 124  }
  0x3a   : > { %2270 = vmatprep.subr.bf16.mxu0 %v2269_v43  ;;  %v2309_v29 = vpack.c.bf16 %v729_v22, %v728_v21  ;;  %v712_v30 = vld [vmem:[%s2870_s14] sm:$0xff]  ;;  %v713_v31 = vld [vmem:[%s2870_s14 + $0x8] sm:$0xff]  ;;  %v2307_v32 = vpack.c.bf16 %v552_v24, %v551_v23  ;;  %v730_v33 = vld [vmem:[%s2870_s14 + $0x90] sm:$0xff]  ;;  %v2895_v44 = vsel %vm560_vm2, %v566_v35, %v567_v36 }
  0x3b   : > { %2296 = vmatpush3.bf16.msra.mxu1 %v2295_v46  ;;  %v731_v34 = vld [vmem:[%s2870_s14 + $0x98] sm:$0xff]  ;;  %v744_v37 = vld [vmem:[%s2870_s14 + $0x100] sm:$0xff]  ;;  %v745_v38 = vld [vmem:[%s2870_s14 + $0x108] sm:$0xff]  ;;  %v2311_v40 = vpack.c.bf16 %v713_v31, %v712_v30 }
  0x3c   : > { %2297 = vmatprep.subr.bf16.mxu1 %v2609_v0  ;;  %v2313_v41 = vpack.c.bf16 %v731_v34, %v730_v33  ;;  %v714_v42 = vld [vmem:[%s2870_s14 + $0x10] sm:$0xff]  ;;  %v715_v43 = vld [vmem:[%s2870_s14 + $0x18] sm:$0xff]  ;;  %v2342_v45 = vpack.c.bf16 %v745_v38, %v744_v37  ;;  %v732_v46 = vld [vmem:[%s2870_s14 + $0xa0] sm:$0xff] }
  0x3d   : > { %2272 = vmatpush3.bf16.msra.mxu0 %v2271_v52  ;;  %v733_v47 = vld [vmem:[%s2870_s14 + $0xa8] sm:$0xff]  ;;  %v746_v48 = vld [vmem:[%s2870_s14 + $0x110] sm:$0xff]  ;;  %v747_v49 = vld [vmem:[%s2870_s14 + $0x118] sm:$0xff]  ;;  %v2315_v50 = vpack.c.bf16 %v715_v43, %v714_v42 }
  0x3e   : > { %2274 = vmatprep.subr.bf16.mxu0 %v2273_v54  ;;  %v2317_v51 = vpack.c.bf16 %v733_v47, %v732_v46  ;;  %v716_v52 = vld [vmem:[%s2870_s14 + $0x20] sm:$0xff]  ;;  %v717_v53 = vld [vmem:[%s2870_s14 + $0x28] sm:$0xff]  ;;  %v2345_v54 = vpack.c.bf16 %v747_v49, %v746_v48  ;;  %v734_v55 = vld [vmem:[%s2870_s14 + $0xb0] sm:$0xff] }
  0x3f   : > { %2299 = vmatpush3.bf16.msra.mxu1 %v2298_v57  ;;  %v735_v56 = vld [vmem:[%s2870_s14 + $0xb8] sm:$0xff]  ;;  %v748_v57 = vld [vmem:[%s2870_s14 + $0x120] sm:$0xff]  ;;  %v749_v58 = vld [vmem:[%s2870_s14 + $0x128] sm:$0xff]  ;;  %v2319_v59 = vpack.c.bf16 %v717_v53, %v716_v52 }
  0x40   : > { %2300 = vmatprep.subr.bf16.mxu1 %v2609_v0  ;;  %v718_v61 = vld [vmem:[%s2870_s14 + $0x30] sm:$0xff]  ;;  %v719_v62 = vld [vmem:[%s2870_s14 + $0x38] sm:$0xff]  ;;  %v737_v7 = vld [vmem:[%s2870_s14 + $0xc8] sm:$0xff] }
  0x41   : > { %2276 = vmatpush3.bf16.msra.mxu0 %v2275_v63  ;;  %v2348_v63 = vpack.c.bf16 %v749_v58, %v748_v57  ;;  %v750_v8 = vld [vmem:[%s2870_s14 + $0x130] sm:$0xff]  ;;  %v2323_v10 = vpack.c.bf16 %v719_v62, %v718_v61  ;;  %v720_v12 = vld [vmem:[%s2870_s14 + $0x40] sm:$0xff]  ;;  %v721_v13 = vld [vmem:[%s2870_s14 + $0x48] sm:$0xff] }
  0x42   : > { %2278 = vmatprep.subr.bf16.mxu0 %v2277_v6  ;;  %v736_v6 = vld [vmem:[%s2870_s14 + $0xc0] sm:$0xff]  ;;  %v738_v15 = vld [vmem:[%s2870_s14 + $0xd0] sm:$0xff]  ;;  %v753_v18 = vld [vmem:[%s2870_s14 + $0x148] sm:$0xff]  ;;  %v2327_v19 = vpack.c.bf16 %v721_v13, %v720_v12 }
  0x43   : > { %2302 = vmatpush3.bf16.msra.mxu1 %v2301_v9  ;;  %v751_v9 = vld [vmem:[%s2870_s14 + $0x138] sm:$0xff]  ;;  %v2325_v11 = vpack.c.bf16 %v737_v7, %v736_v6  ;;  %v722_v21 = vld [vmem:[%s2870_s14 + $0x50] sm:$0xff]  ;;  %v740_v24 = vld [vmem:[%s2870_s14 + $0xe0] sm:$0xff] }
  0x44   : > { %2303 = vmatprep.subr.bf16.mxu1 %v2609_v0  ;;  %v2351_v14 = vpack.c.bf16 %v751_v9, %v750_v8  ;;  %v723_v22 = vld [vmem:[%s2870_s14 + $0x58] sm:$0xff]  ;;  %v741_v25 = vld [vmem:[%s2870_s14 + $0xe8] sm:$0xff]  ;;  %v724_v30 = vld [vmem:[%s2870_s14 + $0x60] sm:$0xff] }
  0x45   : > { %2280 = vmatpush3.bf16.msra.mxu0 %v2279_v16  ;;  %v739_v16 = vld [vmem:[%s2870_s14 + $0xd8] sm:$0xff]  ;;  %v2331_v28 = vpack.c.bf16 %v723_v22, %v722_v21  ;;  %v725_v31 = vld [vmem:[%s2870_s14 + $0x68] sm:$0xff]  ;;  %v742_v33 = vld [vmem:[%s2870_s14 + $0xf0] sm:$0xff] }
  0x46   : > { %2282 = vmatprep.subr.bf16.mxu0 %v2281_v17  ;;  %v752_v17 = vld [vmem:[%s2870_s14 + $0x140] sm:$0xff]  ;;  %v755_v27 = vld [vmem:[%s2870_s14 + $0x158] sm:$0xff]  ;;  %v757_v36 = vld [vmem:[%s2870_s14 + $0x168] sm:$0xff]  ;;  %v2335_v37 = vpack.c.bf16 %v725_v31, %v724_v30 }
  0x47   : > { %2305 = vmatpush3.bf16.msra.mxu1 %v2304_v20  ;;  %v2329_v20 = vpack.c.bf16 %v739_v16, %v738_v15  ;;  %v2354_v23 = vpack.c.bf16 %v753_v18, %v752_v17  ;;  %v743_v34 = vld [vmem:[%s2870_s14 + $0xf8] sm:$0xff]  ;;  %v756_v35 = vld [vmem:[%s2870_s14 + $0x160] sm:$0xff]  ;;  %v758_v43 = vld [vmem:[%s2870_s14 + $0x170] sm:$0xff] }
  0x48   : > { %2306 = vmatprep.subr.bf16.mxu1 %v2609_v0  ;;  %v2337_v38 = vpack.c.bf16 %v743_v34, %v742_v33  ;;  %v2360_v42 = vpack.c.bf16 %v757_v36, %v756_v35 }
  0x49   : > { %2284 = vmatpush3.bf16.msra.mxu0 %v2283_v26  ;;  %v754_v26 = vld [vmem:[%s2870_s14 + $0x150] sm:$0xff] }
  0x4a   : > { %2310 = vmatprep.subr.bf16.mxu0 %v2309_v29  ;;  %v2333_v29 = vpack.c.bf16 %v741_v25, %v740_v24 }
  0x4b   : > { %2308 = vmatpush3.bf16.msra.mxu1 %v2307_v32  ;;  %v2357_v32 = vpack.c.bf16 %v755_v27, %v754_v26 }
  0x4c   : > { %637 = vmatmul.mubr.f32.vlgmr.msra.gmra.mrb[0].mxu0 %v2890_v39  ;;  %2341 = vmatprep.subr.bf16.mxu1 %v2609_v0 }
  0x4d   : > { %2312 = vmatpush3.bf16.msra.mxu0 %v2311_v40  ;;  %831 = vmatprep.mubr.f32.mxu0 %v2851_v60  ;;  %v2321_v60 = vpack.c.bf16 %v735_v56, %v734_v55  ;;  %v726_v40 = vld [vmem:[%s2870_s14 + $0x70] sm:$0xff]  ;;  %v1980_v56 = vld [vmem:[%s496_s28] ss:$0 sm:$0xff]  ;;  %s1973_s28 = sshll.u32 %s3005_s27, 5 }
  0x4e   : > { %2314 = vmatprep.subr.bf16.mxu0 %v2313_v41  ;;  %2165 = vmatmul.mubr.f32.vlgmr.msra.gmra.mrb[0].mxu1 %v2895_v44  ;;  %v727_v41 = vld [vmem:[%s2870_s14 + $0x78] sm:$0xff] }
  0x4f   : > { %2343 = vmatpush3.bf16.msra.mxu1 %v2342_v45  ;;  %2199 = vmatprep.mubr.msk.f32.mxu1 %vm2610_vm0, %v2611_v1  ;;  %v759_v45 = vld [vmem:[%s2870_s14 + $0x178] sm:$0xff]  ;;  %v2339_v46 = vpack.c.bf16 %v727_v41, %v726_v40  ;;  %s2614_s14 = smov 116  }
  0x50   : > { %2344 = vmatprep.subr.bf16.mxu1 %v2609_v0  ;;  %v2363_v47 = vpack.c.bf16 %v759_v45, %v758_v43 }
  0x51   : > { %2316 = vmatpush3.bf16.msra.mxu0 %v2315_v50  ;;  %v1979_v50 = vld [vmem:[%s493_s15] ss:$0 sm:$0xff]  ;;  %s2617_s15 = smov 120  }
  0x52   : > { %2318 = vmatprep.subr.bf16.mxu0 %v2317_v51 }
  0x53   : > { %2346 = vmatpush3.bf16.msra.mxu1 %v2345_v54 }
  0x54   : > { %2347 = vmatprep.subr.bf16.mxu1 %v2609_v0 }
  0x55   : > { %2320 = vmatpush3.bf16.msra.mxu0 %v2319_v59 }
  0x56   : > { %2322 = vmatprep.subr.bf16.mxu0 %v2321_v60 }
  0x57   : > { %2349 = vmatpush3.bf16.msra.mxu1 %v2348_v63 }
  0x58   : > { %2350 = vmatprep.subr.bf16.mxu1 %v2609_v0 }
  0x59   : > { %2324 = vmatpush3.bf16.msra.mxu0 %v2323_v10 }
  0x5a   : > { %2326 = vmatprep.subr.bf16.mxu0 %v2325_v11 }
  0x5b   : > { %2352 = vmatpush3.bf16.msra.mxu1 %v2351_v14 }
  0x5c   : > { %2353 = vmatprep.subr.bf16.mxu1 %v2609_v0 }
  0x5d   : > { %2328 = vmatpush3.bf16.msra.mxu0 %v2327_v19 }
  0x5e   : > { %2330 = vmatprep.subr.bf16.mxu0 %v2329_v20 }
  0x5f   : > { %2355 = vmatpush3.bf16.msra.mxu1 %v2354_v23 }
  0x60   : > { %2356 = vmatprep.subr.bf16.mxu1 %v2609_v0 }
  0x61   : > { %2332 = vmatpush3.bf16.msra.mxu0 %v2331_v28 }
  0x62   : > { %2334 = vmatprep.subr.bf16.mxu0 %v2333_v29 }
  0x63   : > { %2358 = vmatpush3.bf16.msra.mxu1 %v2357_v32 }
  0x64   : > { %2359 = vmatprep.subr.bf16.mxu1 %v2609_v0 }
  0x65   : > { %2336 = vmatpush3.bf16.msra.mxu0 %v2335_v37 }
  0x66   : > { %2338 = vmatprep.subr.bf16.mxu0 %v2337_v38 }
  0x67   : > { %2361 = vmatpush3.bf16.msra.mxu1 %v2360_v42 }
  0x68   : > { %2362 = vmatprep.subr.bf16.mxu1 %v2609_v0 }
  0x69   : > { %2340 = vmatpush3.bf16.msra.mxu0 %v2339_v46 }
  0x6a   : > { %2212 = vmatprep.subr.mxu0 %v2611_v1 }
  0x6b   : > { %2364 = vmatpush3.bf16.msra.mxu1 %v2363_v47 }
  0x6c   : > { %832 = vmatmul.mubr.f32.vlgmr.msra.gmra.mrb[2].mxu0 %v2890_v39  ;;  %2202 = vmatprep.subr.mxu1 %v2611_v1 }
  0x6d   : > { %2214 = vmatprep.mubr.msk.f32.mxu0 %vm2610_vm0, %v2611_v1 }
  0x6e   : > { %2200 = vmatmul.mubr.f32.vlgmr.msra.gmra.mrb[2].mxu1 %v2895_v44 }
  0x6f   : > { %2204 = vmatprep.mubr.msk.f32.mxu1 %vm2610_vm0, %v2611_v1 }
  0x90   : > { %v946_v10 = vpop.permute.xlu1 %945 }
  0x94   : > { %v936_v62 = vpop.permute.xlu0 %935 }
  0x98   : > { %v914_v8 = vpop.permute.xlu0 %913 }
  0x9c   : > { %v924_v11 = vpop.permute.xlu0 %923 }
 0x11f   : > { %v2039_v48 = vpop.f32.mrb[0].mxu0 }
 0x120   : > { %v2040_v49 = vpop.f32.mrb[1].mxu0 }
 0x121   : > { %v2041_v51 = vadd.f32 %v2040_v49, %v2039_v48  ;;  %v708_v52 = vpop.f32.mrb[0].mxu1 }
 0x122   : > { %v2166_v39 = vpop.f32.mrb[1].mxu1 }
 0x123   : > { %v639_v53 = vadd.f32 %v2041_v51, %v1979_v50 }
 0x125   : > { %v709_v54 = vadd.f32 %v708_v52, %v639_v53 }
 0x127   : > { %v927_v7 = vmul.f32 %v2781_v4, %v709_v54  ;;  %v916_v9 = vmul.f32 %v914_v8, %v709_v54  ;;  %v926_v13 = vmul.f32 %v924_v11, %v709_v54 }
 0x13f   : > { %v2091_v44 = vpop.f32.mrb[2].mxu0 }
 0x140   : > { %v2092_v55 = vpop.f32.mrb[3].mxu0 }
 0x141   : > { %v2093_v57 = vadd.f32 %v2092_v55, %v2091_v44  ;;  %v903_v58 = vpop.f32.mrb[2].mxu1 }
 0x142   : > { %v2201_v59 = vpop.f32.mrb[3].mxu1 }
 0x143   : > { %v834_v60 = vadd.f32 %v2093_v57, %v1980_v56 }
 0x145   : > { %v2964_v61 = vadd.f32 %v903_v58, %v834_v60 }
 0x147   : > { %v949_v63 = vmul.f32 %v2766_v2, %v2964_v61  ;;  %v938_v6 = vmul.f32 %v936_v62, %v2964_v61  ;;  %v911_v2 = vmul.f32 %v2798_v5, %v709_v54  ;;  %v948_v4 = vmul.f32 %v946_v10, %v2964_v61 }
 0x148   : > { %v933_v20 = vmul.f32 %v2776_v3, %v2964_v61 }
 0x149   : > { %951 = vrot.lane.b32.xlu1 %v949_v63, %s2612_s13  ;;  %940 = vrot.lane.b32.xlu0 %v938_v6, %s2613_s9 }
 0x14d   : > { %929 = vrot.lane.b32.xlu1 %v927_v7, %s2612_s13 }
 0x151   : > { %918 = vrot.lane.b32.xlu1 %v916_v9, %s2613_s9 }
 0x1bb   : > { %v952_v12 = vpop.permute.xlu1 %951  ;;  %v941_v19 = vpop.permute.xlu0 %940 }
 0x1bc   : > { %v954_v18 = vadd.f32 %v952_v12, %v948_v4  ;;  %v943_v21 = vsub.f32 %v933_v20, %v941_v19 }
 0x1bf   : > { %v930_v14 = vpop.permute.xlu1 %929 }
 0x1c0   : > { %v932_v15 = vadd.f32 %v930_v14, %v926_v13 }
 0x1c2   : > { %956 = vrot.lane.b32.xlu1 %v932_v15, %s2614_s14 }
 0x1c3   : > { %v919_v16 = vpop.permute.xlu1 %918 }
 0x1c4   : > { %v921_v17 = vsub.f32 %v911_v2, %v919_v16 }
 0x1c6   : > { %1136 = vrot.lane.b32.xlu1 %v932_v15, %s2613_s9  ;;  %1133 = vrot.lane.b32.xlu0 %v921_v17, %s2615_s23 }
 0x1ca   : > { %1316 = vrot.lane.b32.xlu1 %v932_v15, %s2616_s25  ;;  %1313 = vrot.lane.b32.xlu0 %v921_v17, %s2617_s15 }
 0x1ce   : > { %1144 = vrot.lane.b32.xlu1 %v954_v18, %s2613_s9  ;;  %962 = vrot.lane.b32.xlu0 %v954_v18, %s2614_s14  ;;  %s3008_s9 = scalar_lea.vmem [#allocation4], %s1973_s28 }
 0x1d2   : > { %1323 = vrot.lane.b32.xlu1 %v954_v18, %s2616_s25  ;;  %1141 = vrot.lane.b32.xlu0 %v943_v21, %s2615_s23  ;;  %s2620_s23 = smov 80   ;;  %s2621_s25 = smov 72  }
 0x1d6   : > { %1502 = vrot.lane.b32.xlu1 %v954_v18, %s2618_s26  ;;  %1320 = vrot.lane.b32.xlu0 %v943_v21, %s2617_s15  ;;  %s2622_s15 = smov 88  }
 0x1da   : > { %1495 = vrot.lane.b32.xlu1 %v932_v15, %s2618_s26  ;;  %1499 = vrot.lane.b32.xlu0 %v943_v21, %s2614_s14  ;;  %s2006_s26 = sshll.u32 %s2769_s29, 5  ;;  %s2624_s29 = smov 24  }
 0x1de   : > { %1492 = vrot.lane.b32.xlu0 %v921_v17, %s2614_s14  ;;  %s2619_s14 = smov 96  }
 0x234   : > { %v957_v5 = vpop.permute.xlu1 %956 }
 0x235   : > { %v960_v28 = vsel %vm959_vm4, %v921_v17, %v957_v5 }
 0x238   : > { %v1137_v22 = vpop.permute.xlu1 %1136  ;;  %v1134_v23 = vpop.permute.xlu0 %1133 }
 0x239   : > { %v1139_v32 = vsel %vm959_vm4, %v1134_v23, %v1137_v22 }
 0x23c   : > { %v1317_v24 = vpop.permute.xlu1 %1316  ;;  %v1314_v25 = vpop.permute.xlu0 %1313 }
 0x23d   : > { %v1319_v36 = vsel %vm959_vm4, %v1314_v25, %v1317_v24 }
 0x240   : > { %v1145_v26 = vpop.permute.xlu1 %1144  ;;  %v963_v3 = vpop.permute.xlu0 %962 }
 0x241   : > { %v965_v27 = vsel %vm959_vm4, %v943_v21, %v963_v3 }
 0x242   : > { %2203 = vmatpush3.xpose.msk.msra.mxu1 %vm966_vm3, %v965_v27 }
 0x243   : > { %2207 = vmatprep.subr.mxu1 %v2611_v1 }
 0x244   : > { %v1324_v29 = vpop.permute.xlu1 %1323  ;;  %v1142_v30 = vpop.permute.xlu0 %1141 }
 0x245   : > { %v1147_v31 = vsel %vm959_vm4, %v1142_v30, %v1145_v26  ;;  %2205 = vmatmul.mubr.msk.f32.vlgmr.msra.gmra.mrb[4].mxu1 %vm966_vm3, %v960_v28 }
 0x246   : > { %2213 = vmatpush3.xpose.msk.msra.mxu0 %vm966_vm3, %v1147_v31  ;;  %2209 = vmatprep.mubr.msk.f32.mxu1 %vm2610_vm0, %v2611_v1 }
 0x247   : > { %2222 = vmatprep.subr.mxu0 %v2611_v1 }
 0x248   : > { %v1321_v33 = vpop.permute.xlu0 %1320  ;;  %v1503_v35 = vpop.permute.xlu1 %1502 }
 0x249   : > { %v1326_v34 = vsel %vm959_vm4, %v1321_v33, %v1324_v29  ;;  %2215 = vmatmul.mubr.msk.f32.vlgmr.msra.gmra.mrb[4].mxu0 %vm966_vm3, %v1139_v32 }
 0x24a   : > { %2223 = vmatpush3.xpose.msk.msra.mxu0 %vm966_vm3, %v1326_v34  ;;  %2224 = vmatprep.mubr.msk.f32.mxu0 %vm2610_vm0, %v2611_v1 }
 0x24b   : > { %2232 = vmatprep.subr.mxu0 %v2611_v1 }
 0x24c   : > { %v1500_v37 = vpop.permute.xlu0 %1499  ;;  %v1496_v40 = vpop.permute.xlu1 %1495 }
 0x24d   : > { %v1505_v38 = vsel %vm959_vm4, %v1500_v37, %v1503_v35  ;;  %2225 = vmatmul.mubr.msk.f32.vlgmr.msra.gmra.mrb[6].mxu0 %vm966_vm3, %v1319_v36 }
 0x24e   : > { %2233 = vmatpush3.xpose.msk.msra.mxu0 %vm966_vm3, %v1505_v38  ;;  %2234 = vmatprep.mubr.msk.f32.mxu0 %vm2610_vm0, %v2611_v1 }
 0x24f   : > { %2365 = vmatprep.subr.bf16.mxu0 %v2609_v0 }
 0x250   : > { %v1493_v41 = vpop.permute.xlu0 %1492 }
 0x251   : > { %v1498_v42 = vsel %vm959_vm4, %v1493_v41, %v1496_v40 }
 0x252   : > { %2235 = vmatmul.mubr.msk.f32.vlgmr.msra.gmra.mrb[8].mxu0 %vm966_vm3, %v1498_v42 }
 0x253   : > { %2250 = vmatprep.mubr.msk.f32.mxu0 %vm2610_vm0, %v2611_v1 }
 0x318   : > { %v1039_v43 = vpop.f32.mrb[4].mxu1 }
 0x319   : > { %1043 = vst.msk [vmem:[%s3008_s9] sm:$0xff] %vm966_vm3, %v1039_v43  ;;  %v2206_v45 = vpop.f32.mrb[5].mxu1  ;;  %v1044_v46 = vsel %vm966_vm3, %v1039_v43, -inf }
 0x31a   : > { %1045 = vmax.xlane.f32.xlu0 %v1044_v46 }
 0x31c   : > { %v1220_v47 = vpop.f32.mrb[4].mxu0 }
 0x31d   : > { %1986 = vst.msk [vmem:[%s3008_s9 + $0x8] sm:$0xff] %vm966_vm3, %v1220_v47  ;;  %v2216_v48 = vpop.f32.mrb[5].mxu0  ;;  %v1226_v49 = vsel %vm966_vm3, %v1220_v47, -inf }
 0x31e   : > { %1227 = vmax.xlane.f32.xlu1 %v1226_v49 }
 0x320   : > { %v1399_v50 = vpop.f32.mrb[6].mxu0 }
 0x321   : > { %1990 = vst.msk [vmem:[%s3008_s9 + $0x10] sm:$0xff] %vm966_vm3, %v1399_v50  ;;  %v2226_v51 = vpop.f32.mrb[7].mxu0  ;;  %v1405_v52 = vsel %vm966_vm3, %v1399_v50, -inf }
 0x322   : > { %1406 = vmax.xlane.f32.xlu0 %v1405_v52 }
 0x325   : > { %v1578_v39 = vpop.f32.mrb[8].mxu0 }
 0x326   : > { %1994 = vst.msk [vmem:[%s3008_s9 + $0x18] sm:$0xff] %vm966_vm3, %v1578_v39  ;;  %v2236_v53 = vpop.f32.mrb[9].mxu0  ;;  %v1584_v54 = vsel %vm966_vm3, %v1578_v39, -inf }
 0x327   : > { %1585 = vmax.xlane.f32.xlu0 %v1584_v54 }
 0x32f   : > { %1056 = vrot.lane.b32.xlu1 %v2964_v61, %s2619_s14 }
 0x3a7   : > { %v1046_v44 = vpop.xlane.xlu0 %1045 }
 0x3a8   : > { %v1047_v55 = vsub.f32 %v1039_v43, %v1046_v44 }
 0x3aa   : > { %v1048_v56 = vmul.f32 1.442695, %v1047_v55 }
 0x3ab   : > { %v1228_v57 = vpop.xlane.xlu1 %1227 }
 0x3ac   : > { %2465 = vpow2.f32 %v1048_v56  ;;  %v1229_v58 = vsub.f32 %v1220_v47, %v1228_v57 }
 0x3ae   : > { %v1230_v59 = vmul.f32 1.442695, %v1229_v58 }
 0x3af   : > { %v1057_v60 = vpop.permute.xlu1 %1056  ;;  %v1407_v62 = vpop.xlane.xlu0 %1406 }
 0x3b0   : > { %2467 = vpow2.f32 %v1230_v59  ;;  %v1408_v63 = vsub.f32 %v1399_v50, %v1407_v62  ;;  %2208 = vmatpush3.msra.mxu1 %v1057_v60 }
 0x3b1   : > { %2217 = vmatprep.subr.mxu1 %v2611_v1 }
 0x3b2   : > { %v1409_v6 = vmul.f32 1.442695, %v1408_v63 }
 0x3b4   : > { %2469 = vpow2.f32 %v1409_v6  ;;  %v1586_v7 = vpop.xlane.xlu0 %1585 }
 0x3b5   : > { %v1587_v8 = vsub.f32 %v1578_v39, %v1586_v7 }
 0x3b6   : > { %v2466_v9 = vpop.eup %2465 }
 0x3b7   : > { %v1588_v10 = vmul.f32 1.442695, %v1587_v8  ;;  %v1050_v11 = vsel %vm966_vm3, %v2466_v9, 0.0 }
 0x3b8   : > { %1051 = vadd.xlane.f32.xlu1 %v1050_v11 }
 0x3b9   : > { %2471 = vpow2.f32 %v1588_v10 }
 0x3ba   : > { %v2468_v12 = vpop.eup %2467 }
 0x3bb   : > { %v1232_v13 = vsel %vm966_vm3, %v2468_v12, 0.0 }
 0x3bc   : > { %1233 = vadd.xlane.f32.xlu0 %v1232_v13 }
 0x3be   : > { %v2470_v14 = vpop.eup %2469 }
 0x3bf   : > { %v1411_v15 = vsel %vm966_vm3, %v2470_v14, 0.0 }
 0x3c0   : > { %1412 = vadd.xlane.f32.xlu1 %v1411_v15 }
 0x3c3   : > { %v2472_v2 = vpop.eup %2471 }
 0x3c4   : > { %v1590_v16 = vsel %vm966_vm3, %v2472_v2, 0.0 }
 0x3c5   : > { %1591 = vadd.xlane.f32.xlu0 %v1590_v16 }
 0x3d1   : > { %1416 = vrot.lane.b32.xlu1 %v2964_v61, %s2620_s23  ;;  %s490_s23 = scalar_lea.vmem %s3180_s3, %s2006_s26  ;;  %s2002_s26 = sshll.u32 %s2595_s21, 4 }
 0x3d2   : > { %v1688_v28 = vld [vmem:[%s490_s23] sm:$0xff]  ;;  %v1689_v29 = vld [vmem:[%s490_s23 + $0x8] sm:$0xff]  ;;  %v1690_v31 = vld [vmem:[%s490_s23 + $0x10] sm:$0xff] }
 0x3d3   : > { %v2366_v30 = vpack.c.bf16 %v1689_v29, %v1688_v28  ;;  %v1691_v32 = vld [vmem:[%s490_s23 + $0x18] sm:$0xff] }
 0x3d4   : > { %v2369_v33 = vpack.c.bf16 %v1691_v32, %v1690_v31 }
 0x3d5   : > { %1595 = vrot.lane.b32.xlu1 %v2964_v61, %s2621_s25  ;;  %2367 = vmatpush3.bf16.msra.mxu0 %v2366_v30  ;;  %s3163_s25 = smov 8  }
 0x3d6   : > { %2368 = vmatprep.subr.bf16.mxu0 %v2609_v0 }
 0x3d9   : > { %2370 = vmatpush3.bf16.msra.mxu0 %v2369_v33 }
 0x3db   : > { %1237 = vrot.lane.b32.xlu0 %v2964_v61, %s2622_s15  ;;  %s2001_s15 = sshll.u32 %s2591_s20, 2 }
 0x3dc   : > { %s1800_s28 = sadd.s32 %s2002_s26, %s2001_s15 }
 0x3dd   : > { %s2003_s14 = sshll.u32 %s1800_s28, 7 }
 0x445   : > { %v1052_v17 = vpop.xlane.xlu1 %1051 }
 0x446   : > { %2473 = vrcp.f32 %v1052_v17 }
 0x449   : > { %v1234_v4 = vpop.xlane.xlu0 %1233 }
 0x44a   : > { %2475 = vrcp.f32 %v1234_v4 }
 0x44d   : > { %v1413_v18 = vpop.xlane.xlu1 %1412 }
 0x44e   : > { %2477 = vrcp.f32 %v1413_v18 }
 0x450   : > { %v2474_v19 = vpop.eup %2473 }
 0x451   : > { %v1054_v20 = vmul.f32 %v2474_v19, %v2466_v9  ;;  %v1417_v23 = vpop.permute.xlu1 %1416 }
 0x452   : > { %v1592_v21 = vpop.xlane.xlu0 %1591 }
 0x453   : > { %2479 = vrcp.f32 %v1592_v21  ;;  %2210 = vmatmul.mubr.msk.f32.vlgmr.msra.gmra.mrb[6].mxu1 %vm966_vm3, %v1054_v20 }
 0x454   : > { %v2476_v5 = vpop.eup %2475  ;;  %2219 = vmatprep.mubr.msk.f32.mxu1 %vm2610_vm0, %v2611_v1 }
 0x455   : > { %v1236_v22 = vmul.f32 %v2476_v5, %v2468_v12  ;;  %v1596_v26 = vpop.permute.xlu1 %1595 }
 0x456   : > { %v1238_v24 = vpop.permute.xlu0 %1237 }
 0x457   : > { %2218 = vmatpush3.msra.mxu1 %v1238_v24 }
 0x458   : > { %v2478_v61 = vpop.eup %2477  ;;  %2220 = vmatmul.mubr.msk.f32.vlgmr.msra.gmra.mrb[8].mxu1 %vm966_vm3, %v1236_v22  ;;  %2227 = vmatprep.subr.mxu1 %v2611_v1 }
 0x459   : > { %v1415_v25 = vmul.f32 %v2478_v61, %v2470_v14  ;;  %2228 = vmatpush3.msra.mxu1 %v1417_v23  ;;  %2229 = vmatprep.mubr.msk.f32.mxu1 %vm2610_vm0, %v2611_v1 }
 0x45a   : > { %2237 = vmatprep.subr.mxu1 %v2611_v1 }
 0x45c   : > { %2230 = vmatmul.mubr.msk.f32.vlgmr.msra.gmra.mrb[10].mxu1 %vm966_vm3, %v1415_v25 }
 0x45d   : > { %v2480_v3 = vpop.eup %2479  ;;  %2238 = vmatpush3.msra.mxu1 %v1596_v26  ;;  %2239 = vmatprep.mubr.msk.f32.mxu1 %vm2610_vm0, %v2611_v1 }
 0x45e   : > { %v1594_v27 = vmul.f32 %v2480_v3, %v2472_v2 }
 0x460   : > { %2240 = vmatmul.mubr.msk.f32.vlgmr.msra.gmra.mrb[12].mxu1 %vm966_vm3, %v1594_v27 }
 0x526   : > { %v1128_v34 = vpop.f32.mrb[6].mxu1 }
 0x527   : > { %v2211_v1 = vpop.f32.mrb[7].mxu1 }
 0x52b   : > { %v1309_v35 = vpop.f32.mrb[8].mxu1 }
 0x52c   : > { %1672 = vrot.lane.b32.xlu0 %v1309_v35, %s3163_s25  ;;  %v2221_v36 = vpop.f32.mrb[9].mxu1  ;;  %s3060_s25 = scalar_lea.hbm %s3159_s11, %s2003_s14 }
 0x52f   : > { %v1488_v37 = vpop.f32.mrb[10].mxu1 }
 0x530   : > { %1676 = vrot.lane.b32.xlu1 %v1488_v37, %s2612_s13  ;;  %v2231_v38 = vpop.f32.mrb[11].mxu1  ;;  %s1803_s13 = sshll.u32 %s3008_s9, 4  ;;  %s2625_s9 = smov [#allocation4]   ;;  %s3055_s13 = int_to_ptr.vmem [resolvable:$true] %s1803_s13 }
 0x531   : > { %s2481_s1 = scalar_lea.vmem %s3055_s13, 512  ;;  %s2485_s2 = sshll.u32 %s2625_s9, 4  ;;  %s2486_s2 = int_to_ptr.vmem [resolvable:$false] %s2485_s2 }
 0x532   : > { %p2482_p0 = scmp.ne.s32.totalorder %s3055_s13, %s2481_s1  ;;  %s2487_s3 = scalar_lea.vmem %s2486_s2, 1024 }
 0x533   : > { %v1667_v40 = vpop.f32.mrb[12].mxu1  ;;  %p2488_p4 = scmp.lt.s32.totalorder %s3055_s13, %s2486_s2  ;;  %p2489_p5 = scmp.lt.s32.totalorder %s2487_s3, %s2481_s1 }
 0x534   : > { %1680 = vrot.lane.b32.xlu0 %v1667_v40, %s2624_s29  ;;  %v2241_v0 = vpop.f32.mrb[13].mxu1  ;;  %p2483_p1 = pnand %p2482_p0, %p2739_p3 }
 0x535   : > { %p2490_p6 = por %p2489_p5, %p2488_p4 }
 0x536   : > { %p2484_p2 = pneg %p2483_p1 }
 0x538   : > { %p2491_p7 = pnand %p2490_p6, %p2484_p2 }
 0x59e   : > { %v1673_v41 = vpop.permute.xlu0 %1672 }
 0x59f   : > { %v1683_v43 = vsel %vm966_vm3, %v1128_v34, %v1673_v41 }
 0x5a2   : > { %v1677_v42 = vpop.permute.xlu1 %1676 }
 0x5a3   : > { %v1685_v45 = vsel %vm1684_vm5, %v1683_v43, %v1677_v42 }
 0x5a6   : > { %v1681_v46 = vpop.permute.xlu0 %1680 }
 0x5a7   : > { %v1687_v47 = vsel %vm1686_vm6, %v1685_v45, %v1681_v46 }
 0x5a8   : > { %2251 = vmatmul.mubr.msk.f32.vlgmr.msra.gmra.mrb[10].mxu0 %vm1692_vm7, %v1687_v47 }
 0x5a9   : > { %2494 = shalt.err (!%p2491_p7)
}
 0x5aa   : > { %s2495_s15 = scalar_lea.hbm %s3060_s25, 512  ;;  %s2499_s14 = scalar_lea.hbm %s3159_s11, 4096 }
 0x5ab   : > { %p2496_p9 = scmp.ne.s32.totalorder %s3060_s25, %s2495_s15  ;;  %p2500_p12 = scmp.lt.u32.totalorder %s3060_s25, %s3159_s11 }
 0x5ac   : > { %p2501_p13 = scmp.lt.u32.totalorder %s2499_s14, %s2495_s15  ;;  %p2503_p1 = scmp.lt.u32.totalorder %s2495_s15, %s3060_s25 }
 0x5ad   : > { %p2497_p10 = pnand %p2496_p9, %p2739_p3 }
 0x5ae   : > { %p2502_p0 = por %p2501_p13, %p2500_p12 }
 0x5af   : > { %p2498_p11 = pneg %p2497_p10 }
 0x5b0   : > { %p2504_p2 = por %p2503_p1, %p2502_p0 }
 0x5b2   : > { %p2505_p4 = pnand %p2504_p2, %p2498_p11 }
 0x5b4   : > { %2508 = shalt.err (!%p2505_p4)
}
 0x5b5   : > { %s2626_s1 = smov 128   ;;  %s3181_s3 = smov 8  }
 0x5b6   : > { %2373 = dma.vmem_to_hbm [thread:$0]  (%p2739_p3), %s3055_s13, 512, %s3060_s25, %s1773_s0, %s2626_s1, %s2626_s1, %s3181_s3  }
 0x5b7   : > { %s1972_s29 = sshll.u32 %s3005_s27, 3  ;;  %s1999_s9 = sshll.u32 %s2595_s21, 2 }
 0x5b8   : > { %s1784_s15 = sadd.s32 %s2591_s20, %s1999_s9  ;;  %s464_s28 = scalar_lea.vmem [#allocation2], %s1972_s29 }
 0x5b9   : > { %s2000_s26 = sshll.u32 %s1784_s15, 7  ;;  %s1788_s14 = sshll.u32 %s464_s28, 4  ;;  %s3095_s14 = int_to_ptr.vmem [resolvable:$true] %s1788_s14 }
 0x5ba   : > { %s3093_s4 = scalar_lea.hbm %s3158_s10, %s2000_s26  ;;  %s1768_s0 = scalar_lea.sflag [#allocation3], %s3005_s27 }
 0x5bb   : > { %s2509_s21 = scalar_lea.vmem %s3095_s14, 128  ;;  %s2627_s20 = smov [#allocation2]  }
 0x5bc   : > { %p2510_p5 = scmp.ne.s32.totalorder %s3095_s14, %s2509_s21  ;;  %s2513_s25 = sshll.u32 %s2627_s20, 4  ;;  %s2514_s25 = int_to_ptr.vmem [resolvable:$false] %s2513_s25 }
 0x5bd   : > { %s2515_s13 = scalar_lea.vmem %s2514_s25, 256  ;;  %p2516_p9 = scmp.lt.s32.totalorder %s3095_s14, %s2514_s25 }
 0x5be   : > { %p2511_p6 = pnand %p2510_p5, %p2739_p3  ;;  %p2517_p10 = scmp.lt.s32.totalorder %s2515_s13, %s2509_s21 }
 0x5c0   : > { %p2512_p7 = pneg %p2511_p6  ;;  %p2518_p11 = por %p2517_p10, %p2516_p9 }
 0x5c2   : > { %p2519_p12 = pnand %p2518_p11, %p2512_p7 }
 0x67b   : > { %v1762_v48 = vpop.f32.mrb[10].mxu0 }
 0x67c   : > { %1766 = vst.msk [vmem:[%s464_s28] sm:$0xff] %vm1692_vm7, %v1762_v48  ;;  %v2252_v49 = vpop.f32.mrb[11].mxu0 }
 0x67d   : > { %2522 = shalt.err (!%p2519_p12)
}
 0x67e   : > { %s2523_s27 = scalar_lea.hbm %s3093_s4, 128  ;;  %s2527_s29 = scalar_lea.hbm %s3158_s10, 1024 }
 0x67f   : > { %p2524_p13 = scmp.ne.s32.totalorder %s3093_s4, %s2523_s27  ;;  %p2528_p2 = scmp.lt.u32.totalorder %s3093_s4, %s3158_s10 }
 0x680   : > { %p2529_p4 = scmp.lt.u32.totalorder %s2527_s29, %s2523_s27  ;;  %p2531_p6 = scmp.lt.u32.totalorder %s2523_s27, %s3093_s4 }
 0x681   : > { %p2525_p0 = pnand %p2524_p13, %p2739_p3 }
 0x682   : > { %p2530_p5 = por %p2529_p4, %p2528_p2 }
 0x683   : > { %p2526_p1 = pneg %p2525_p0 }
 0x684   : > { %p2532_p7 = por %p2531_p6, %p2530_p5 }
 0x686   : > { %p2533_p9 = pnand %p2532_p7, %p2526_p1 }
 0x688   : > { %2536 = shalt.err (!%p2533_p9)
}
 0x689   : > { %2372 = dma.vmem_to_hbm [thread:$0]  (%p2739_p3), %s3095_s14, 128, %s3093_s4, %s1768_s0  }
 0x68a PF: > { %p2383_p10 = scmp.ge.s32.totalorder %s2607_s24, 2  ;;  %s1818_s26 = sand.u32 1, %s2579_s17  }
 0x68b   : > { %s1819_s28 = scalar_lea.sflag [#allocation3], %s1818_s26 }
 0x68c   : > { %p2377_p11 = pnand %p2383_p10, %p2748_p8 }
 0x68e   : > { %2570 = dma.done.wait (!%p2377_p11), %s1819_s28, 128  }
 0x68f   : > { %2572 = vsyncadd (!%p2377_p11), %s1819_s28, 4294967168  ;;  %s1828_s23 = scalar_lea.sflag [#allocation5], %s1818_s26 }
 0x690   : > { %2574 = dma.done.wait (!%p2377_p11), %s1828_s23, 512  }
 0x691   : > { %2576 = vsyncadd (!%p2377_p11), %s1828_s23, 4294966784  ;;  %s28_s24 = sadd.s32 1, %s2607_s24   ;;  %s3182_s21 = sld [smem:[#allocation8_spill]] }
 0x692   : > { %p25_p12 = scmp.ge.s32.totalorder %s28_s24, 10   ;;  %s3183_s4 = sld [smem:[#allocation9_spill]] }
 0x693   : > { %s3184_s23 = sld [smem:[#allocation10_spill]]  ;;  %s3185_s17 = smov %s2583_s18 }
 0x694   : > { %s3186_s18 = smov %s2587_s19  ;;  %s3187_s19 = smov %s2757_s16 }
 0x695   : > { %s3188_s20 = smov %s2599_s22  ;;  %27 = sbr.rel (!%p25_p12) target bundleno = 14 (0xe), region = 130 }
 0x698   : > { %s3189_s22 = smov %s3183_s4 }
 0x69c   :  { %1833 = vsyncpa [#allocation3], 1 }
 0x69d   :  { %1835 = vsyncpa [#allocation3 + $0x1], 1 }
 0x69e   :  { %1836 = vsyncpa [#allocation5], 1 }
 0x69f   :  { %1838 = vsyncpa [#allocation5 + $0x1], 1 }

</bundles_post_ra>
